<compile_context>
chip_gen: v6e
topology: v6e:2x2x1
jax: 0.10.0
libtpu: 0.0.40
codegen_flags: <defaults>
</compile_context>

<pallas_src>
import functools

import jax
import jax.numpy as jnp
from jax import lax
from jax.experimental import pallas as pl
from jax.experimental.pallas import tpu as pltpu

# Contract dim 1 of lhs with dim 1 of rhs: F . F^T without materializing F.T.
_CONTRACT_LAST = (((1,), (1,)), ((), ()))

_TARGET_BLOCK_BYTES = 2 << 20        # ~2 MiB per input block per grid step
_OUT_ROWS, _OUT_COLS = 8, 128        # minimum lane-dense f32 output tile


def _bsp_kernel(fs_ref, ft_ref, out_ref, gs_acc, gt_acc, *,
                n_square: int, unroll: bool):
    m = pl.program_id(0)              # 0: source Gram, 1: target Gram
    k = pl.program_id(1)              # feature-tile reduction step
    n_k = pl.num_programs(1)

    @pl.when(k == 0)
    def _init():
        gs_acc[...] = jnp.zeros_like(gs_acc)
        gt_acc[...] = jnp.zeros_like(gt_acc)

    @pl.when(m == 0)
    def _accumulate_source():
        gs_acc[...] += lax.dot_general(fs_ref[...], fs_ref[...], _CONTRACT_LAST,
                                       preferred_element_type=jnp.float32)

    @pl.when(m == 1)
    def _accumulate_target():
        gt_acc[...] += lax.dot_general(ft_ref[...], ft_ref[...], _CONTRACT_LAST,
                                       preferred_element_type=jnp.float32)

    @pl.when(k == n_k - 1)
    def _solve():
        def lambda_max(g):
            # Repeated squaring with Frobenius normalization: after n_square
            # rounds the columns of h lie (numerically) in the dominant
            # eigenspace of g.
            def body(_, h):
                h = h * lax.rsqrt(jnp.sum(h * h) + 1e-30)
                return jnp.dot(h, h, preferred_element_type=jnp.float32)

            h = lax.fori_loop(0, n_square, body, g, unroll=unroll)
            # Row-sum (XLU reduce) gives a vector aligned with the top
            # eigenvector; one Rayleigh quotient against the ORIGINAL Gram
            # gives lambda_max.  NOTE: measure-zero failure mode if the
            # all-ones seed is exactly orthogonal to the dominant eigenvector.
            v = jnp.sum(h, axis=0, keepdims=True)                     # (1, B)
            w = jnp.dot(v, g, preferred_element_type=jnp.float32)     # (1, B)
            return jnp.sum(w * v) / (jnp.sum(v * v) + 1e-30)

        @pl.when(m == 0)
        def _():
            out_ref[...] = jnp.full(out_ref.shape, lambda_max(gs_acc[...]),
                                    jnp.float32)

        @pl.when(m == 1)
        def _():
            out_ref[...] = jnp.full(out_ref.shape, lambda_max(gt_acc[...]),
                                    jnp.float32)


def _round_up(x: int, mult: int) -> int:
    return ((x + mult - 1) // mult) * mult


def _vmem_capacity_bytes() -> int:
    try:
        cap = getattr(pltpu.get_tpu_info(), "vmem_capacity_bytes", None)
        if cap:
            return int(cap)
    except Exception:
        pass
    return 64 << 20        # conservative (v7x-sized) fallback


def _tile_for(d: int, n_k: int) -> int:
    if n_k <= 1:
        return d           # single block == full feature dim, no padding
    return _round_up(pl.cdiv(d, n_k), 128)


def batch_spectral_penalization_loss(f_s, f_t, bsp_tradeoff, n_square: int = 8):
    """loss = bsp_tradeoff * (sigma_max(f_s)^2 + sigma_max(f_t)^2)."""
    bs, ds = f_s.shape
    bt, dt = f_t.shape
    isz_s = f_s.dtype.itemsize
    isz_t = f_t.dtype.itemsize

    # --- tile selection: ~2 MiB per input block (128-lane aligned) ----------
    def steps_for(b, d, isz):
        max_tile = max(128, (_TARGET_BLOCK_BYTES // max(1, b * isz)) // 128 * 128)
        return pl.cdiv(d, max_tile)

    n_k = max(1, steps_for(bs, ds, isz_s), steps_for(bt, dt, isz_t))

    # --- generation-aware VMEM budget; grow n_k until the footprint fits ----
    vmem_cap = _vmem_capacity_bytes()
    vmem_budget = min(int(vmem_cap * 0.65), 96 << 20)

    def footprint(nk):
        ts_, tt_ = _tile_for(ds, nk), _tile_for(dt, nk)
        inputs = 2 * (bs * ts_ * isz_s + bt * tt_ * isz_t)   # double-buffered
        grams = 4 * (bs * bs + bt * bt)                      # f32 accumulators
        outs = 2 * _OUT_ROWS * _OUT_COLS * 4
        return ts_, tt_, inputs + grams + outs + (2 << 20)

    max_nk = max(1, pl.cdiv(ds, 128), pl.cdiv(dt, 128))
    ts, tt, fp = footprint(n_k)
    while fp > vmem_budget and n_k < max_nk:
        n_k = min(max_nk, n_k * 2)
        ts, tt, fp = footprint(n_k)
    vmem_limit = int(min(max(fp + (4 << 20), 16 << 20), int(vmem_cap * 0.9)))

    # --- zero-pad feature dims to a common grid length (Gram unchanged) -----
    ds_pad, dt_pad = ts * n_k, tt * n_k
    if ds_pad != ds:
        f_s = jnp.pad(f_s, ((0, 0), (0, ds_pad - ds)))
    if dt_pad != dt:
        f_t = jnp.pad(f_t, ((0, 0), (0, dt_pad - dt)))

    kernel = functools.partial(_bsp_kernel, n_square=n_square,
                               unroll=max(bs, bt) < 128)

    out = pl.pallas_call(
        kernel,
        out_shape=jax.ShapeDtypeStruct((2 * _OUT_ROWS, _OUT_COLS), jnp.float32),
        grid_spec=pltpu.PrefetchScalarGridSpec(
            num_scalar_prefetch=0,
            grid=(2, n_k),
            in_specs=[
                # The inactive matrix's block index is frozen at 0 so it is
                # DMA'd only once (its contents are unused on that m-slice).
                pl.BlockSpec((bs, ts), lambda m, k: (0, k * (1 - m))),
                pl.BlockSpec((bt, tt), lambda m, k: (0, k * m)),
            ],
            out_specs=pl.BlockSpec((_OUT_ROWS, _OUT_COLS), lambda m, k: (m, 0)),
            scratch_shapes=[
                pltpu.VMEM((bs, bs), jnp.float32),
                pltpu.VMEM((bt, bt), jnp.float32),
            ],
        ),
        compiler_params=pltpu.CompilerParams(
            # m (source vs target Gram) is parallel -> both v7x TensorCores;
            # k is the feature-dim reduction.
            dimension_semantics=("parallel", "arbitrary"),
            vmem_limit_bytes=vmem_limit,
        ),
    )(f_s, f_t)

    lam = out[0, 0] + out[_OUT_ROWS, 0]
    return jnp.float32(bsp_tradeoff) * lam


def _reference_loss(f_s, f_t, bsp_tradeoff):
    s_s = jnp.linalg.svd(f_s.astype(jnp.float32), compute_uv=False)
    s_t = jnp.linalg.svd(f_t.astype(jnp.float32), compute_uv=False)
    return bsp_tradeoff * (s_s[0] ** 2 + s_t[0] ** 2)


if __name__ == "__main__":
    key = jax.random.PRNGKey(0)
    k1, k2 = jax.random.split(key)

    batch, feat = 8, 32
    bsp_tradeoff = 1e-4  # deterministic "parameter" from __init__

    f_s = jax.random.normal(k1, (batch, feat), dtype=jnp.float32)
    f_t = jax.random.normal(k2, (batch, feat), dtype=jnp.float32)

    loss = batch_spectral_penalization_loss(f_s, f_t, bsp_tradeoff)
    loss = jax.block_until_ready(loss)

    ref = _reference_loss(f_s, f_t, bsp_tradeoff)
    assert jnp.allclose(loss, ref, rtol=1e-2, atol=1e-6), (loss, ref)

    print("KERNEL_OK")
</pallas_src>

<mosaic_0001>
module attributes {stable_mosaic.version = 11 : i64} {
  func.func @_bsp_kernel(%arg0: i32, %arg1: i32, %arg2: memref<8x32xf32, #tpu.memory_space<vmem>>, %arg3: memref<8x32xf32, #tpu.memory_space<vmem>>, %arg4: memref<8x128xf32, #tpu.memory_space<vmem>>, %arg5: memref<8x8xf32, #tpu.memory_space<vmem>>, %arg6: memref<8x8xf32, #tpu.memory_space<vmem>>) attributes {dimension_semantics = [#tpu.dimension_semantics<parallel>, #tpu.dimension_semantics<arbitrary>], iteration_bounds = array<i64: 2, 1>, scalar_prefetch = 0 : i64, scratch_operands = 2 : i64, tpu.core_type = #tpu.core_type<tc>, window_params = [{transform_indices = @transform_0, window_bounds = array<i64: 8, 32>}, {transform_indices = @transform_1, window_bounds = array<i64: 8, 32>}, {transform_indices = @transform_2, window_bounds = array<i64: 8, 128>}]} {
    %c0_i32 = arith.constant 0 : i32
    %0 = arith.cmpi eq, %arg1, %c0_i32 : i32
    %1 = arith.extui %0 : i1 to i32
    %c0_i32_0 = arith.constant 0 : i32
    %2 = arith.cmpi ne, %1, %c0_i32_0 : i32
    scf.if %2 {
      %cst = arith.constant 0.000000e+00 : f32
      %12 = vector.broadcast %cst : f32 to vector<8x8xf32>
      %c0 = arith.constant 0 : index
      %c0_6 = arith.constant 0 : index
      %13 = vector.load %arg5[%c0, %c0_6] : memref<8x8xf32, #tpu.memory_space<vmem>>, vector<8x8xf32>
      tpu.vector_store %arg5[%c0, %c0_6], %12 {strides = array<i32>} : memref<8x8xf32, #tpu.memory_space<vmem>>, vector<8x8xf32>,
      %cst_7 = arith.constant 0.000000e+00 : f32
      %14 = vector.broadcast %cst_7 : f32 to vector<8x8xf32>
      %c0_8 = arith.constant 0 : index
      %c0_9 = arith.constant 0 : index
      %15 = vector.load %arg6[%c0_8, %c0_9] : memref<8x8xf32, #tpu.memory_space<vmem>>, vector<8x8xf32>
      tpu.vector_store %arg6[%c0_8, %c0_9], %14 {strides = array<i32>} : memref<8x8xf32, #tpu.memory_space<vmem>>, vector<8x8xf32>,
    } else {
    }
    %c0_i32_1 = arith.constant 0 : i32
    %3 = arith.cmpi eq, %arg0, %c0_i32_1 : i32
    %4 = arith.extui %3 : i1 to i32
    %c0_i32_2 = arith.constant 0 : i32
    %5 = arith.cmpi ne, %4, %c0_i32_2 : i32
    scf.if %5 {
      %c0 = arith.constant 0 : index
      %c0_6 = arith.constant 0 : index
      %12 = vector.load %arg5[%c0, %c0_6] : memref<8x8xf32, #tpu.memory_space<vmem>>, vector<8x8xf32>
      %c0_7 = arith.constant 0 : index
      %c0_8 = arith.constant 0 : index
      %13 = vector.load %arg2[%c0_7, %c0_8] : memref<8x32xf32, #tpu.memory_space<vmem>>, vector<8x32xf32>
      %c0_9 = arith.constant 0 : index
      %c0_10 = arith.constant 0 : index
      %14 = vector.load %arg2[%c0_9, %c0_10] : memref<8x32xf32, #tpu.memory_space<vmem>>, vector<8x32xf32>
      %cst = arith.constant dense<0.000000e+00> : vector<8x8xf32>
      %15 = tpu.matmul %13, %14, %cst {dimension_numbers = #tpu.dot_dimension_numbers<[1], [1], [0], [0], [0, 0, 1, 0], [], []>} : vector<8x32xf32>, vector<8x32xf32>, vector<8x8xf32> -> vector<8x8xf32>
      %16 = arith.addf %12, %15 : vector<8x8xf32>
      %c0_11 = arith.constant 0 : index
      %c0_12 = arith.constant 0 : index
      %17 = vector.load %arg5[%c0_11, %c0_12] : memref<8x8xf32, #tpu.memory_space<vmem>>, vector<8x8xf32>
      tpu.vector_store %arg5[%c0_11, %c0_12], %16 {strides = array<i32>} : memref<8x8xf32, #tpu.memory_space<vmem>>, vector<8x8xf32>,
    } else {
    }
    %c1_i32 = arith.constant 1 : i32
    %6 = arith.cmpi eq, %arg0, %c1_i32 : i32
    %7 = arith.extui %6 : i1 to i32
    %c0_i32_3 = arith.constant 0 : i32
    %8 = arith.cmpi ne, %7, %c0_i32_3 : i32
    scf.if %8 {
      %c0 = arith.constant 0 : index
      %c0_6 = arith.constant 0 : index
      %12 = vector.load %arg6[%c0, %c0_6] : memref<8x8xf32, #tpu.memory_space<vmem>>, vector<8x8xf32>
      %c0_7 = arith.constant 0 : index
      %c0_8 = arith.constant 0 : index
      %13 = vector.load %arg3[%c0_7, %c0_8] : memref<8x32xf32, #tpu.memory_space<vmem>>, vector<8x32xf32>
      %c0_9 = arith.constant 0 : index
      %c0_10 = arith.constant 0 : index
      %14 = vector.load %arg3[%c0_9, %c0_10] : memref<8x32xf32, #tpu.memory_space<vmem>>, vector<8x32xf32>
      %cst = arith.constant dense<0.000000e+00> : vector<8x8xf32>
      %15 = tpu.matmul %13, %14, %cst {dimension_numbers = #tpu.dot_dimension_numbers<[1], [1], [0], [0], [0, 0, 1, 0], [], []>} : vector<8x32xf32>, vector<8x32xf32>, vector<8x8xf32> -> vector<8x8xf32>
      %16 = arith.addf %12, %15 : vector<8x8xf32>
      %c0_11 = arith.constant 0 : index
      %c0_12 = arith.constant 0 : index
      %17 = vector.load %arg6[%c0_11, %c0_12] : memref<8x8xf32, #tpu.memory_space<vmem>>, vector<8x8xf32>
      tpu.vector_store %arg6[%c0_11, %c0_12], %16 {strides = array<i32>} : memref<8x8xf32, #tpu.memory_space<vmem>>, vector<8x8xf32>,
    } else {
    }
    %c0_i32_4 = arith.constant 0 : i32
    %9 = arith.cmpi eq, %arg1, %c0_i32_4 : i32
    %10 = arith.extui %9 : i1 to i32
    %c0_i32_5 = arith.constant 0 : i32
    %11 = arith.cmpi ne, %10, %c0_i32_5 : i32
    scf.if %11 {
      %c0_i32_6 = arith.constant 0 : i32
      %12 = arith.cmpi eq, %arg0, %c0_i32_6 : i32
      %13 = arith.extui %12 : i1 to i32
      %c0_i32_7 = arith.constant 0 : i32
      %14 = arith.cmpi ne, %13, %c0_i32_7 : i32
      scf.if %14 {
        %c0 = arith.constant 0 : index
        %c0_10 = arith.constant 0 : index
        %18 = vector.load %arg5[%c0, %c0_10] : memref<8x8xf32, #tpu.memory_space<vmem>>, vector<8x8xf32>
        %c0_i32_11 = arith.constant 0 : i32
        %19 = arith.mulf %18, %18 : vector<8x8xf32>
        %20 = vector.shape_cast %19 : vector<8x8xf32> to vector<1x8x8xf32>
        %cst = arith.constant dense<0.000000e+00> : vector<1xf32>
        %21 = vector.multi_reduction <add>, %20, %cst [1, 2] : vector<1x8x8xf32> to vector<1xf32>
        %22 = vector.shape_cast %21 : vector<1xf32> to vector<1x1x1xf32>
        %23 = vector.extract %22[0, 0, 0] : f32 from vector<1x1x1xf32>
        %cst_12 = arith.constant 1.000000e-30 : f32
        %24 = arith.addf %23, %cst_12 : f32
        %25 = math.rsqrt %24 : f32
        %26 = vector.broadcast %25 : f32 to vector<8x8xf32>
        %27 = arith.mulf %18, %26 : vector<8x8xf32>
        %cst_13 = arith.constant dense<0.000000e+00> : vector<8x8xf32>
        %28 = tpu.matmul %27, %27, %cst_13 {dimension_numbers = #tpu.dot_dimension_numbers<[1], [0], [0], [1], [0, 0, 1, 1], [], []>} : vector<8x8xf32>, vector<8x8xf32>, vector<8x8xf32> -> vector<8x8xf32>
        %c1_i32_14 = arith.constant 1 : i32
        %29 = arith.mulf %28, %28 : vector<8x8xf32>
        %30 = vector.shape_cast %29 : vector<8x8xf32> to vector<1x8x8xf32>
        %cst_15 = arith.constant dense<0.000000e+00> : vector<1xf32>
        %31 = vector.multi_reduction <add>, %30, %cst_15 [1, 2] : vector<1x8x8xf32> to vector<1xf32>
        %32 = vector.shape_cast %31 : vector<1xf32> to vector<1x1x1xf32>
        %33 = vector.extract %32[0, 0, 0] : f32 from vector<1x1x1xf32>
        %cst_16 = arith.constant 1.000000e-30 : f32
        %34 = arith.addf %33, %cst_16 : f32
        %35 = math.rsqrt %34 : f32
        %36 = vector.broadcast %35 : f32 to vector<8x8xf32>
        %37 = arith.mulf %28, %36 : vector<8x8xf32>
        %cst_17 = arith.constant dense<0.000000e+00> : vector<8x8xf32>
        %38 = tpu.matmul %37, %37, %cst_17 {dimension_numbers = #tpu.dot_dimension_numbers<[1], [0], [0], [1], [0, 0, 1, 1], [], []>} : vector<8x8xf32>, vector<8x8xf32>, vector<8x8xf32> -> vector<8x8xf32>
        %c2_i32 = arith.constant 2 : i32
        %39 = arith.mulf %38, %38 : vector<8x8xf32>
        %40 = vector.shape_cast %39 : vector<8x8xf32> to vector<1x8x8xf32>
        %cst_18 = arith.constant dense<0.000000e+00> : vector<1xf32>
        %41 = vector.multi_reduction <add>, %40, %cst_18 [1, 2] : vector<1x8x8xf32> to vector<1xf32>
        %42 = vector.shape_cast %41 : vector<1xf32> to vector<1x1x1xf32>
        %43 = vector.extract %42[0, 0, 0] : f32 from vector<1x1x1xf32>
        %cst_19 = arith.constant 1.000000e-30 : f32
        %44 = arith.addf %43, %cst_19 : f32
        %45 = math.rsqrt %44 : f32
        %46 = vector.broadcast %45 : f32 to vector<8x8xf32>
        %47 = arith.mulf %38, %46 : vector<8x8xf32>
        %cst_20 = arith.constant dense<0.000000e+00> : vector<8x8xf32>
        %48 = tpu.matmul %47, %47, %cst_20 {dimension_numbers = #tpu.dot_dimension_numbers<[1], [0], [0], [1], [0, 0, 1, 1], [], []>} : vector<8x8xf32>, vector<8x8xf32>, vector<8x8xf32> -> vector<8x8xf32>
        %c3_i32 = arith.constant 3 : i32
        %49 = arith.mulf %48, %48 : vector<8x8xf32>
        %50 = vector.shape_cast %49 : vector<8x8xf32> to vector<1x8x8xf32>
        %cst_21 = arith.constant dense<0.000000e+00> : vector<1xf32>
        %51 = vector.multi_reduction <add>, %50, %cst_21 [1, 2] : vector<1x8x8xf32> to vector<1xf32>
        %52 = vector.shape_cast %51 : vector<1xf32> to vector<1x1x1xf32>
        %53 = vector.extract %52[0, 0, 0] : f32 from vector<1x1x1xf32>
        %cst_22 = arith.constant 1.000000e-30 : f32
        %54 = arith.addf %53, %cst_22 : f32
        %55 = math.rsqrt %54 : f32
        %56 = vector.broadcast %55 : f32 to vector<8x8xf32>
        %57 = arith.mulf %48, %56 : vector<8x8xf32>
        %cst_23 = arith.constant dense<0.000000e+00> : vector<8x8xf32>
        %58 = tpu.matmul %57, %57, %cst_23 {dimension_numbers = #tpu.dot_dimension_numbers<[1], [0], [0], [1], [0, 0, 1, 1], [], []>} : vector<8x8xf32>, vector<8x8xf32>, vector<8x8xf32> -> vector<8x8xf32>
        %c4_i32 = arith.constant 4 : i32
        %59 = arith.mulf %58, %58 : vector<8x8xf32>
        %60 = vector.shape_cast %59 : vector<8x8xf32> to vector<1x8x8xf32>
        %cst_24 = arith.constant dense<0.000000e+00> : vector<1xf32>
        %61 = vector.multi_reduction <add>, %60, %cst_24 [1, 2] : vector<1x8x8xf32> to vector<1xf32>
        %62 = vector.shape_cast %61 : vector<1xf32> to vector<1x1x1xf32>
        %63 = vector.extract %62[0, 0, 0] : f32 from vector<1x1x1xf32>
        %cst_25 = arith.constant 1.000000e-30 : f32
        %64 = arith.addf %63, %cst_25 : f32
        %65 = math.rsqrt %64 : f32
        %66 = vector.broadcast %65 : f32 to vector<8x8xf32>
        %67 = arith.mulf %58, %66 : vector<8x8xf32>
        %cst_26 = arith.constant dense<0.000000e+00> : vector<8x8xf32>
        %68 = tpu.matmul %67, %67, %cst_26 {dimension_numbers = #tpu.dot_dimension_numbers<[1], [0], [0], [1], [0, 0, 1, 1], [], []>} : vector<8x8xf32>, vector<8x8xf32>, vector<8x8xf32> -> vector<8x8xf32>
        %c5_i32 = arith.constant 5 : i32
        %69 = arith.mulf %68, %68 : vector<8x8xf32>
        %70 = vector.shape_cast %69 : vector<8x8xf32> to vector<1x8x8xf32>
        %cst_27 = arith.constant dense<0.000000e+00> : vector<1xf32>
        %71 = vector.multi_reduction <add>, %70, %cst_27 [1, 2] : vector<1x8x8xf32> to vector<1xf32>
        %72 = vector.shape_cast %71 : vector<1xf32> to vector<1x1x1xf32>
        %73 = vector.extract %72[0, 0, 0] : f32 from vector<1x1x1xf32>
        %cst_28 = arith.constant 1.000000e-30 : f32
        %74 = arith.addf %73, %cst_28 : f32
        %75 = math.rsqrt %74 : f32
        %76 = vector.broadcast %75 : f32 to vector<8x8xf32>
        %77 = arith.mulf %68, %76 : vector<8x8xf32>
        %cst_29 = arith.constant dense<0.000000e+00> : vector<8x8xf32>
        %78 = tpu.matmul %77, %77, %cst_29 {dimension_numbers = #tpu.dot_dimension_numbers<[1], [0], [0], [1], [0, 0, 1, 1], [], []>} : vector<8x8xf32>, vector<8x8xf32>, vector<8x8xf32> -> vector<8x8xf32>
        %c6_i32 = arith.constant 6 : i32
        %79 = arith.mulf %78, %78 : vector<8x8xf32>
        %80 = vector.shape_cast %79 : vector<8x8xf32> to vector<1x8x8xf32>
        %cst_30 = arith.constant dense<0.000000e+00> : vector<1xf32>
        %81 = vector.multi_reduction <add>, %80, %cst_30 [1, 2] : vector<1x8x8xf32> to vector<1xf32>
        %82 = vector.shape_cast %81 : vector<1xf32> to vector<1x1x1xf32>
        %83 = vector.extract %82[0, 0, 0] : f32 from vector<1x1x1xf32>
        %cst_31 = arith.constant 1.000000e-30 : f32
        %84 = arith.addf %83, %cst_31 : f32
        %85 = math.rsqrt %84 : f32
        %86 = vector.broadcast %85 : f32 to vector<8x8xf32>
        %87 = arith.mulf %78, %86 : vector<8x8xf32>
        %cst_32 = arith.constant dense<0.000000e+00> : vector<8x8xf32>
        %88 = tpu.matmul %87, %87, %cst_32 {dimension_numbers = #tpu.dot_dimension_numbers<[1], [0], [0], [1], [0, 0, 1, 1], [], []>} : vector<8x8xf32>, vector<8x8xf32>, vector<8x8xf32> -> vector<8x8xf32>
        %c7_i32 = arith.constant 7 : i32
        %89 = arith.mulf %88, %88 : vector<8x8xf32>
        %90 = vector.shape_cast %89 : vector<8x8xf32> to vector<1x8x8xf32>
        %cst_33 = arith.constant dense<0.000000e+00> : vector<1xf32>
        %91 = vector.multi_reduction <add>, %90, %cst_33 [1, 2] : vector<1x8x8xf32> to vector<1xf32>
        %92 = vector.shape_cast %91 : vector<1xf32> to vector<1x1x1xf32>
        %93 = vector.extract %92[0, 0, 0] : f32 from vector<1x1x1xf32>
        %cst_34 = arith.constant 1.000000e-30 : f32
        %94 = arith.addf %93, %cst_34 : f32
        %95 = math.rsqrt %94 : f32
        %96 = vector.broadcast %95 : f32 to vector<8x8xf32>
        %97 = arith.mulf %88, %96 : vector<8x8xf32>
        %cst_35 = arith.constant dense<0.000000e+00> : vector<8x8xf32>
        %98 = tpu.matmul %97, %97, %cst_35 {dimension_numbers = #tpu.dot_dimension_numbers<[1], [0], [0], [1], [0, 0, 1, 1], [], []>} : vector<8x8xf32>, vector<8x8xf32>, vector<8x8xf32> -> vector<8x8xf32>
        %cst_36 = arith.constant dense<0.000000e+00> : vector<8xf32>
        %99 = vector.multi_reduction <add>, %98, %cst_36 [0] : vector<8x8xf32> to vector<8xf32>
        %100 = vector.shape_cast %99 : vector<8xf32> to vector<1x8xf32>
        %cst_37 = arith.constant dense<0.000000e+00> : vector<1x8xf32>
        %101 = tpu.matmul %100, %18, %cst_37 {dimension_numbers = #tpu.dot_dimension_numbers<[1], [0], [0], [1], [0, 0, 1, 1], [], []>} : vector<1x8xf32>, vector<8x8xf32>, vector<1x8xf32> -> vector<1x8xf32>
        %102 = arith.mulf %101, %100 : vector<1x8xf32>
        %103 = vector.shape_cast %102 : vector<1x8xf32> to vector<1x1x8xf32>
        %cst_38 = arith.constant dense<0.000000e+00> : vector<1xf32>
        %104 = vector.multi_reduction <add>, %103, %cst_38 [1, 2] : vector<1x1x8xf32> to vector<1xf32>
        %105 = vector.shape_cast %104 : vector<1xf32> to vector<1x1x1xf32>
        %106 = vector.extract %105[0, 0, 0] : f32 from vector<1x1x1xf32>
        %107 = arith.mulf %100, %100 : vector<1x8xf32>
        %108 = vector.shape_cast %107 : vector<1x8xf32> to vector<1x1x8xf32>
        %cst_39 = arith.constant dense<0.000000e+00> : vector<1xf32>
        %109 = vector.multi_reduction <add>, %108, %cst_39 [1, 2] : vector<1x1x8xf32> to vector<1xf32>
        %110 = vector.shape_cast %109 : vector<1xf32> to vector<1x1x1xf32>
        %111 = vector.extract %110[0, 0, 0] : f32 from vector<1x1x1xf32>
        %cst_40 = arith.constant 1.000000e-30 : f32
        %112 = arith.addf %111, %cst_40 : f32
        %113 = arith.divf %106, %112 : f32
        %114 = vector.broadcast %113 : f32 to vector<8x128xf32>
        %c0_41 = arith.constant 0 : index
        %c0_42 = arith.constant 0 : index
        %115 = vector.load %arg4[%c0_41, %c0_42] : memref<8x128xf32, #tpu.memory_space<vmem>>, vector<8x128xf32>
        tpu.vector_store %arg4[%c0_41, %c0_42], %114 {strides = array<i32>} : memref<8x128xf32, #tpu.memory_space<vmem>>, vector<8x128xf32>,
      } else {
      }
      %c1_i32_8 = arith.constant 1 : i32
      %15 = arith.cmpi eq, %arg0, %c1_i32_8 : i32
      %16 = arith.extui %15 : i1 to i32
      %c0_i32_9 = arith.constant 0 : i32
      %17 = arith.cmpi ne, %16, %c0_i32_9 : i32
      scf.if %17 {
        %c0 = arith.constant 0 : index
        %c0_10 = arith.constant 0 : index
        %18 = vector.load %arg6[%c0, %c0_10] : memref<8x8xf32, #tpu.memory_space<vmem>>, vector<8x8xf32>
        %c0_i32_11 = arith.constant 0 : i32
        %19 = arith.mulf %18, %18 : vector<8x8xf32>
        %20 = vector.shape_cast %19 : vector<8x8xf32> to vector<1x8x8xf32>
        %cst = arith.constant dense<0.000000e+00> : vector<1xf32>
        %21 = vector.multi_reduction <add>, %20, %cst [1, 2] : vector<1x8x8xf32> to vector<1xf32>
        %22 = vector.shape_cast %21 : vector<1xf32> to vector<1x1x1xf32>
        %23 = vector.extract %22[0, 0, 0] : f32 from vector<1x1x1xf32>
        %cst_12 = arith.constant 1.000000e-30 : f32
        %24 = arith.addf %23, %cst_12 : f32
        %25 = math.rsqrt %24 : f32
        %26 = vector.broadcast %25 : f32 to vector<8x8xf32>
        %27 = arith.mulf %18, %26 : vector<8x8xf32>
        %cst_13 = arith.constant dense<0.000000e+00> : vector<8x8xf32>
        %28 = tpu.matmul %27, %27, %cst_13 {dimension_numbers = #tpu.dot_dimension_numbers<[1], [0], [0], [1], [0, 0, 1, 1], [], []>} : vector<8x8xf32>, vector<8x8xf32>, vector<8x8xf32> -> vector<8x8xf32>
        %c1_i32_14 = arith.constant 1 : i32
        %29 = arith.mulf %28, %28 : vector<8x8xf32>
        %30 = vector.shape_cast %29 : vector<8x8xf32> to vector<1x8x8xf32>
        %cst_15 = arith.constant dense<0.000000e+00> : vector<1xf32>
        %31 = vector.multi_reduction <add>, %30, %cst_15 [1, 2] : vector<1x8x8xf32> to vector<1xf32>
        %32 = vector.shape_cast %31 : vector<1xf32> to vector<1x1x1xf32>
        %33 = vector.extract %32[0, 0, 0] : f32 from vector<1x1x1xf32>
        %cst_16 = arith.constant 1.000000e-30 : f32
        %34 = arith.addf %33, %cst_16 : f32
        %35 = math.rsqrt %34 : f32
        %36 = vector.broadcast %35 : f32 to vector<8x8xf32>
        %37 = arith.mulf %28, %36 : vector<8x8xf32>
        %cst_17 = arith.constant dense<0.000000e+00> : vector<8x8xf32>
        %38 = tpu.matmul %37, %37, %cst_17 {dimension_numbers = #tpu.dot_dimension_numbers<[1], [0], [0], [1], [0, 0, 1, 1], [], []>} : vector<8x8xf32>, vector<8x8xf32>, vector<8x8xf32> -> vector<8x8xf32>
        %c2_i32 = arith.constant 2 : i32
        %39 = arith.mulf %38, %38 : vector<8x8xf32>
        %40 = vector.shape_cast %39 : vector<8x8xf32> to vector<1x8x8xf32>
        %cst_18 = arith.constant dense<0.000000e+00> : vector<1xf32>
        %41 = vector.multi_reduction <add>, %40, %cst_18 [1, 2] : vector<1x8x8xf32> to vector<1xf32>
        %42 = vector.shape_cast %41 : vector<1xf32> to vector<1x1x1xf32>
        %43 = vector.extract %42[0, 0, 0] : f32 from vector<1x1x1xf32>
        %cst_19 = arith.constant 1.000000e-30 : f32
        %44 = arith.addf %43, %cst_19 : f32
        %45 = math.rsqrt %44 : f32
        %46 = vector.broadcast %45 : f32 to vector<8x8xf32>
        %47 = arith.mulf %38, %46 : vector<8x8xf32>
        %cst_20 = arith.constant dense<0.000000e+00> : vector<8x8xf32>
        %48 = tpu.matmul %47, %47, %cst_20 {dimension_numbers = #tpu.dot_dimension_numbers<[1], [0], [0], [1], [0, 0, 1, 1], [], []>} : vector<8x8xf32>, vector<8x8xf32>, vector<8x8xf32> -> vector<8x8xf32>
        %c3_i32 = arith.constant 3 : i32
        %49 = arith.mulf %48, %48 : vector<8x8xf32>
        %50 = vector.shape_cast %49 : vector<8x8xf32> to vector<1x8x8xf32>
        %cst_21 = arith.constant dense<0.000000e+00> : vector<1xf32>
        %51 = vector.multi_reduction <add>, %50, %cst_21 [1, 2] : vector<1x8x8xf32> to vector<1xf32>
        %52 = vector.shape_cast %51 : vector<1xf32> to vector<1x1x1xf32>
        %53 = vector.extract %52[0, 0, 0] : f32 from vector<1x1x1xf32>
        %cst_22 = arith.constant 1.000000e-30 : f32
        %54 = arith.addf %53, %cst_22 : f32
        %55 = math.rsqrt %54 : f32
        %56 = vector.broadcast %55 : f32 to vector<8x8xf32>
        %57 = arith.mulf %48, %56 : vector<8x8xf32>
        %cst_23 = arith.constant dense<0.000000e+00> : vector<8x8xf32>
        %58 = tpu.matmul %57, %57, %cst_23 {dimension_numbers = #tpu.dot_dimension_numbers<[1], [0], [0], [1], [0, 0, 1, 1], [], []>} : vector<8x8xf32>, vector<8x8xf32>, vector<8x8xf32> -> vector<8x8xf32>
        %c4_i32 = arith.constant 4 : i32
        %59 = arith.mulf %58, %58 : vector<8x8xf32>
        %60 = vector.shape_cast %59 : vector<8x8xf32> to vector<1x8x8xf32>
        %cst_24 = arith.constant dense<0.000000e+00> : vector<1xf32>
        %61 = vector.multi_reduction <add>, %60, %cst_24 [1, 2] : vector<1x8x8xf32> to vector<1xf32>
        %62 = vector.shape_cast %61 : vector<1xf32> to vector<1x1x1xf32>
        %63 = vector.extract %62[0, 0, 0] : f32 from vector<1x1x1xf32>
        %cst_25 = arith.constant 1.000000e-30 : f32
        %64 = arith.addf %63, %cst_25 : f32
        %65 = math.rsqrt %64 : f32
        %66 = vector.broadcast %65 : f32 to vector<8x8xf32>
        %67 = arith.mulf %58, %66 : vector<8x8xf32>
        %cst_26 = arith.constant dense<0.000000e+00> : vector<8x8xf32>
        %68 = tpu.matmul %67, %67, %cst_26 {dimension_numbers = #tpu.dot_dimension_numbers<[1], [0], [0], [1], [0, 0, 1, 1], [], []>} : vector<8x8xf32>, vector<8x8xf32>, vector<8x8xf32> -> vector<8x8xf32>
        %c5_i32 = arith.constant 5 : i32
        %69 = arith.mulf %68, %68 : vector<8x8xf32>
        %70 = vector.shape_cast %69 : vector<8x8xf32> to vector<1x8x8xf32>
        %cst_27 = arith.constant dense<0.000000e+00> : vector<1xf32>
        %71 = vector.multi_reduction <add>, %70, %cst_27 [1, 2] : vector<1x8x8xf32> to vector<1xf32>
        %72 = vector.shape_cast %71 : vector<1xf32> to vector<1x1x1xf32>
        %73 = vector.extract %72[0, 0, 0] : f32 from vector<1x1x1xf32>
        %cst_28 = arith.constant 1.000000e-30 : f32
        %74 = arith.addf %73, %cst_28 : f32
        %75 = math.rsqrt %74 : f32
        %76 = vector.broadcast %75 : f32 to vector<8x8xf32>
        %77 = arith.mulf %68, %76 : vector<8x8xf32>
        %cst_29 = arith.constant dense<0.000000e+00> : vector<8x8xf32>
        %78 = tpu.matmul %77, %77, %cst_29 {dimension_numbers = #tpu.dot_dimension_numbers<[1], [0], [0], [1], [0, 0, 1, 1], [], []>} : vector<8x8xf32>, vector<8x8xf32>, vector<8x8xf32> -> vector<8x8xf32>
        %c6_i32 = arith.constant 6 : i32
        %79 = arith.mulf %78, %78 : vector<8x8xf32>
        %80 = vector.shape_cast %79 : vector<8x8xf32> to vector<1x8x8xf32>
        %cst_30 = arith.constant dense<0.000000e+00> : vector<1xf32>
        %81 = vector.multi_reduction <add>, %80, %cst_30 [1, 2] : vector<1x8x8xf32> to vector<1xf32>
        %82 = vector.shape_cast %81 : vector<1xf32> to vector<1x1x1xf32>
        %83 = vector.extract %82[0, 0, 0] : f32 from vector<1x1x1xf32>
        %cst_31 = arith.constant 1.000000e-30 : f32
        %84 = arith.addf %83, %cst_31 : f32
        %85 = math.rsqrt %84 : f32
        %86 = vector.broadcast %85 : f32 to vector<8x8xf32>
        %87 = arith.mulf %78, %86 : vector<8x8xf32>
        %cst_32 = arith.constant dense<0.000000e+00> : vector<8x8xf32>
        %88 = tpu.matmul %87, %87, %cst_32 {dimension_numbers = #tpu.dot_dimension_numbers<[1], [0], [0], [1], [0, 0, 1, 1], [], []>} : vector<8x8xf32>, vector<8x8xf32>, vector<8x8xf32> -> vector<8x8xf32>
        %c7_i32 = arith.constant 7 : i32
        %89 = arith.mulf %88, %88 : vector<8x8xf32>
        %90 = vector.shape_cast %89 : vector<8x8xf32> to vector<1x8x8xf32>
        %cst_33 = arith.constant dense<0.000000e+00> : vector<1xf32>
        %91 = vector.multi_reduction <add>, %90, %cst_33 [1, 2] : vector<1x8x8xf32> to vector<1xf32>
        %92 = vector.shape_cast %91 : vector<1xf32> to vector<1x1x1xf32>
        %93 = vector.extract %92[0, 0, 0] : f32 from vector<1x1x1xf32>
        %cst_34 = arith.constant 1.000000e-30 : f32
        %94 = arith.addf %93, %cst_34 : f32
        %95 = math.rsqrt %94 : f32
        %96 = vector.broadcast %95 : f32 to vector<8x8xf32>
        %97 = arith.mulf %88, %96 : vector<8x8xf32>
        %cst_35 = arith.constant dense<0.000000e+00> : vector<8x8xf32>
        %98 = tpu.matmul %97, %97, %cst_35 {dimension_numbers = #tpu.dot_dimension_numbers<[1], [0], [0], [1], [0, 0, 1, 1], [], []>} : vector<8x8xf32>, vector<8x8xf32>, vector<8x8xf32> -> vector<8x8xf32>
        %cst_36 = arith.constant dense<0.000000e+00> : vector<8xf32>
        %99 = vector.multi_reduction <add>, %98, %cst_36 [0] : vector<8x8xf32> to vector<8xf32>
        %100 = vector.shape_cast %99 : vector<8xf32> to vector<1x8xf32>
        %cst_37 = arith.constant dense<0.000000e+00> : vector<1x8xf32>
        %101 = tpu.matmul %100, %18, %cst_37 {dimension_numbers = #tpu.dot_dimension_numbers<[1], [0], [0], [1], [0, 0, 1, 1], [], []>} : vector<1x8xf32>, vector<8x8xf32>, vector<1x8xf32> -> vector<1x8xf32>
        %102 = arith.mulf %101, %100 : vector<1x8xf32>
        %103 = vector.shape_cast %102 : vector<1x8xf32> to vector<1x1x8xf32>
        %cst_38 = arith.constant dense<0.000000e+00> : vector<1xf32>
        %104 = vector.multi_reduction <add>, %103, %cst_38 [1, 2] : vector<1x1x8xf32> to vector<1xf32>
        %105 = vector.shape_cast %104 : vector<1xf32> to vector<1x1x1xf32>
        %106 = vector.extract %105[0, 0, 0] : f32 from vector<1x1x1xf32>
        %107 = arith.mulf %100, %100 : vector<1x8xf32>
        %108 = vector.shape_cast %107 : vector<1x8xf32> to vector<1x1x8xf32>
        %cst_39 = arith.constant dense<0.000000e+00> : vector<1xf32>
        %109 = vector.multi_reduction <add>, %108, %cst_39 [1, 2] : vector<1x1x8xf32> to vector<1xf32>
        %110 = vector.shape_cast %109 : vector<1xf32> to vector<1x1x1xf32>
        %111 = vector.extract %110[0, 0, 0] : f32 from vector<1x1x1xf32>
        %cst_40 = arith.constant 1.000000e-30 : f32
        %112 = arith.addf %111, %cst_40 : f32
        %113 = arith.divf %106, %112 : f32
        %114 = vector.broadcast %113 : f32 to vector<8x128xf32>
        %c0_41 = arith.constant 0 : index
        %c0_42 = arith.constant 0 : index
        %115 = vector.load %arg4[%c0_41, %c0_42] : memref<8x128xf32, #tpu.memory_space<vmem>>, vector<8x128xf32>
        tpu.vector_store %arg4[%c0_41, %c0_42], %114 {strides = array<i32>} : memref<8x128xf32, #tpu.memory_space<vmem>>, vector<8x128xf32>,
      } else {
      }
    } else {
    }
    return
  }
  func.func @transform_0(%arg0: i32, %arg1: i32) -> (i32, i32) {
    %c1_i32 = arith.constant 1 : i32
    %0 = arith.subi %c1_i32, %arg0 : i32
    %1 = arith.muli %arg1, %0 : i32
    %c0_i32 = arith.constant 0 : i32
    %c0_i32_0 = arith.constant 0 : i32
    return %c0_i32, %1 : i32, i32
  }
  func.func @transform_1(%arg0: i32, %arg1: i32) -> (i32, i32) {
    %0 = arith.muli %arg1, %arg0 : i32
    %c0_i32 = arith.constant 0 : i32
    %c0_i32_0 = arith.constant 0 : i32
    return %c0_i32, %0 : i32, i32
  }
  func.func @transform_2(%arg0: i32, %arg1: i32) -> (i32, i32) {
    %c0_i32 = arith.constant 0 : i32
    %c0_i32_0 = arith.constant 0 : i32
    return %arg0, %c0_i32 : i32, i32
  }
}

</mosaic_0001>

<bundles_post_ra>
// kernel: tpu_custom_call.1
= control target key start
LH: loop header
LB: loop body
LE: loop exit
PB: predicated region body
PF: predicated region fallthrough
CT: control target
= control target key end

     0   :  { %7 = vsyncpa [#allocation5], 0  ;;  %s2977_s0 = inlined_call_operand.hbm [shape: f32[8,32], index: 0, kind: input, shape index: {}]   ;;  %s2978_s1 = inlined_call_operand.hbm [shape: f32[8,32], index: 1, kind: input, shape index: {}]   ;;  %s2979_s2 = inlined_call_operand.hbm [shape: f32[16,128], index: 2, kind: output, shape index: {}]  }
   0x1   :  { %9 = vsyncpa [#allocation5 + $0x1], 0 }
   0x2   :  { %10 = vsyncpa [#allocation8], 0 }
   0x3   :  { %12 = vsyncpa [#allocation8 + $0x1], 0 }
   0x4   :  { %13 = vsyncpa [#allocation6], 0 }
   0x5   :  { %15 = vsyncpa [#allocation6 + $0x1], 0  ;;  %s2724_s9 = smov 0   ;;  %s2726_s10 = smov 0  }
   0x6   :  { %s2728_s11 = smov 0   ;;  %s2730_s12 = smov 0  }
   0x7   :  { %s2732_s13 = smov 0   ;;  %s2734_s14 = smov 0  }
   0x8 LB: > { %s2181_s15 = sadd.s32 4294967295, %s2695_s14   ;;  %s2182_s16 = sadd.s32 4294967294, %s2695_s14   ;;  %s2695_s14 = sphi %s2734_s14, %s21_s14   ;;  %s2691_s13 = sphi %s2732_s13, %s2988_s13   ;;  %s2687_s12 = sphi %s2730_s12, %s2987_s12   ;;  %s2683_s11 = sphi %s2728_s11, %s2986_s11   ;;  %s2679_s10 = sphi %s2726_s10, %s2985_s10   ;;  %s2675_s9 = sphi %s2724_s9, %s2984_s9  }
   0x9   : > { %s33_s17 = sadd.s32 1, %s2691_s13  ;;  %s98_s18 = sadd.s32 1, %s2683_s11 }
   0xa   : > { %p35_p0 = scmp.ge.s32.totalorder %s33_s17, 2  ;;  %p108_p1 = scmp.ne.s32.totalorder %s2683_s11, %s2679_s10 }
   0xb   : > { %p109_p2 = scmp.eq.s32.totalorder %s2181_s15, 1  ;;  %p114_p3 = scmp.ne.s32.totalorder %s2679_s10, %s2675_s9 }
   0xc   : > { %s2990_s17 = smov (%p35_p0, %s33_s17), 0  ;;  %p115_p5 = scmp.eq.s32.totalorder %s2182_s16, 1 }
   0xd   : > { %p2766_p4 = por %p109_p2, %p108_p1  ;;  %s95_s20 = ssub.s32 %s2691_s13, %s2990_s17 }
   0xe   : > { %p96_p7 = scmp.eq.s32.totalorder %s95_s20, 0  ;;  %p2773_p8 = por %p115_p5, %p114_p3 }
   0xf   : > { %p2458_p9 = scmp.lt.s32.totalorder %s2695_s14, 2  ;;  %p2459_p10 = scmp.eq.s32.totalorder %s2695_s14, 0 }
  0x10   : > { %s2779_s22 = scalar_select %p96_p7, %s2683_s11, %s98_s18  }
  0x11   : > { %s2697_s23 = smov [#allocation4]   ;;  %p2187_p11 = scmp.ge.s32.totalorder %s2695_s14, 1 }
  0x12   : > { %s148_s24 = sshll.u32 %s2697_s23, 4  ;;  %p2783_p12 = pnand %p2459_p10, %p2458_p9  ;;  %s149_s24 = int_to_ptr.vmem [resolvable:$true] %s148_s24 }
  0x13   : > { %p172_p13 = scmp.lt.s32.totalorder %s2695_s14, 3  ;;  %s2698_s26 = smov [#allocation7]  }
  0x14   : > { %s167_s27 = sshll.u32 %s2698_s26, 4  ;;  %p2561_p0 = pneg %p2783_p12  ;;  %s168_s27 = int_to_ptr.vmem [resolvable:$true] %s167_s27 }
  0x15   : > { %s2570_s28 = scalar_lea.vmem %s149_s24, 128  ;;  %s2577_s29 = scalar_lea.vmem %s149_s24, 256 }
  0x16   : > { %p2571_p1 = scmp.ne.s32.totalorder %s149_s24, %s2570_s28  ;;  %p2578_p5 = scmp.lt.s32.totalorder %s149_s24, %s149_s24 }
  0x17   : > { %p2579_p7 = scmp.lt.s32.totalorder %s2577_s29, %s2570_s28 }
  0x18   : > { %p2573_p2 = pnand %p2571_p1, %p2561_p0 }
  0x19   : > { %p2580_p9 = por %p2579_p7, %p2578_p5 }
  0x1a   : > { %p2574_p3 = pneg %p2573_p2 }
  0x1c   : > { %p2581_p10 = pnand %p2580_p9, %p2574_p3 }
  0x1e   : > { %2584 = shalt.err (!%p2581_p10)
}
  0x1f   : > { %2450 = dma.hbm_to_vmem [thread:$0]  (!%p2783_p12), %s2977_s0, 128, %s149_s24, [#allocation5]  }
  0x20   : > { %p173_p6 = pnand %p2187_p11, %p172_p13  ;;  %s2596_s4 = scalar_lea.vmem %s168_s27, 128 }
  0x21   : > { %p2597_p1 = scmp.ne.s32.totalorder %s168_s27, %s2596_s4  ;;  %s2603_s5 = scalar_lea.vmem %s168_s27, 256 }
  0x22   : > { %p2604_p5 = scmp.lt.s32.totalorder %s168_s27, %s168_s27  ;;  %p2605_p7 = scmp.lt.s32.totalorder %s2603_s5, %s2596_s4 }
  0x23   : > { %p2599_p2 = pnand %p2597_p1, %p2561_p0 }
  0x24   : > { %p2606_p9 = por %p2605_p7, %p2604_p5 }
  0x25   : > { %p2600_p3 = pneg %p2599_p2 }
  0x27   : > { %p2607_p10 = pnand %p2606_p9, %p2600_p3 }
  0x29   : > { %2610 = shalt.err (!%p2607_p10)
}
  0x2a   : > { %2453 = dma.hbm_to_vmem [thread:$0]  (!%p2783_p12), %s2978_s1, 128, %s168_s27, [#allocation8]  }
  0x2b   : > { %176 = sbr.rel (%p173_p6) target bundleno = 8936 (0x22e8), region = 28  ;;  %p2461_p11 = scmp.eq.s32.totalorder (!%p173_p6), %s2181_s15, 0 }
  0x30   : > { %2662 = dma.done.wait (%p2461_p11), [#allocation5], 128  }
  0x31   : > { %2664 = vsyncadd (%p2461_p11), [#allocation5], 4294967168 }
  0x32   : > { %2666 = dma.done.wait (%p2461_p11), [#allocation8], 128  }
  0x33   : > { %2668 = vsyncadd (%p2461_p11), [#allocation8], 4294967168  ;;  %s214_s8 = sand.u32 1, %s2679_s10   ;;  %vm224_vm0 = vcmask 64512   ;;  %v2699_v0 = vmov 0.0   ;;  %p2191_p6 = scmp.ne.s32.totalorder %s2687_s12, 0 }
  0x34   : > { %s2190_s16 = sshll.u32 %s214_s8, 3  ;;  %225 = vst.msk [vmem:[#allocation2] sm:$0xff] %vm224_vm0, %v2699_v0  ;;  %226 = vst.msk [vmem:[#allocation3] sm:$0xff] %vm224_vm0, %v2699_v0 }
  0x35   : > { %s2817_s18 = scalar_lea.vmem [#allocation9], %s2190_s16  ;;  %230 = sbr.rel (%p2191_p6) target bundleno = 259 (0x103), region = 44 }
  0x3a   : > { %v232_v1 = vld [vmem:[#allocation4] sm:$0xff]  ;;  %vm233_vm1 = vcmask 261120   ;;  %v2700_v2 = vmov 0.0   ;;  %vm2701_vm2 = vmmov 0  }
  0x3b   : > { %2261 = vmatprep.subr.mxu0 %v2700_v2  ;;  %2263 = vmatprep.mubr.msk.f32.mxu0 %vm2701_vm2, %v2700_v2  ;;  %v231_v3 = vld [vmem:[#allocation2] sm:$0xff] }
  0x3c   : > { %2262 = vmatpush3.xpose.msk.msra.mxu0 %vm233_vm1, %v232_v1 }
  0x3f   : > { %2264 = vmatmul.mubr.msk.f32.vlgmr.msra.gmra.mxu0 %vm233_vm1, %v232_v1 }
  0xff   : > { %v303_v4 = vpop.f32.mrf.mxu0 }
 0x100   : > { %v307_v5 = vadd.f32 %v303_v4, %v231_v3 }
 0x101   : > { %v2265_v6 = vpop.f32.mrf.mxu0 }
 0x102   : > { %309 = vst.msk [vmem:[#allocation2] sm:$0xff] %vm224_vm0, %v307_v5 }
 0x103 PF: > { %p2194_p12 = scmp.ne.s32.totalorder %s2687_s12, 1 }
 0x105   : > { %313 = sbr.rel (%p2194_p12) target bundleno = 467 (0x1d3), region = 48 }
 0x10a   : > { %v315_v7 = vld [vmem:[#allocation7] sm:$0xff]  ;;  %vm316_vm3 = vcmask 261120   ;;  %v2702_v8 = vmov 0.0   ;;  %vm2703_vm4 = vmmov 0   ;;  %v314_v9 = vld [vmem:[#allocation3] sm:$0xff] }
 0x10b   : > { %2266 = vmatprep.subr.mxu0 %v2702_v8  ;;  %2268 = vmatprep.mubr.msk.f32.mxu0 %vm2703_vm4, %v2702_v8 }
 0x10c   : > { %2267 = vmatpush3.xpose.msk.msra.mxu0 %vm316_vm3, %v315_v7 }
 0x10f   : > { %2269 = vmatmul.mubr.msk.f32.vlgmr.msra.gmra.mxu0 %vm316_vm3, %v315_v7 }
 0x1cf   : > { %v386_v10 = vpop.f32.mrf.mxu0 }
 0x1d0   : > { %v390_v11 = vadd.f32 %v386_v10, %v314_v9 }
 0x1d1   : > { %v2270_v12 = vpop.f32.mrf.mxu0 }
 0x1d2   : > { %392 = vst.msk [vmem:[#allocation3] sm:$0xff] %vm224_vm0, %v390_v11 }
 0x1d3 PF: > { %398 = sbr.rel (%p2191_p6) target bundleno = 4690 (0x1252), region = 56 }
 0x1d8   : > { %v2829_v13 = vld [vmem:[#allocation2] sm:$0xff]  ;;  %v2704_v19 = vmov 0.0   ;;  %vm2705_vm5 = vmmov 0   ;;  %vm1202_vm6 = vcmask 57344  }
 0x1d9   : > { %v400_v14 = vmul.f32 %v2829_v13, %v2829_v13  ;;  %2271 = vmatprep.subr.mxu0 %v2704_v19  ;;  %2276 = vmatprep.subr.mxu1 %v2704_v19 }
 0x1da   : > { %2273 = vmatprep.mubr.msk.f32.mxu0 %vm2705_vm5, %v2704_v19  ;;  %2278 = vmatprep.mubr.msk.f32.mxu1 %vm2705_vm5, %v2704_v19 }
 0x1db   : > { %v402_v15 = vsel %vm224_vm0, %v400_v14, 0.0 }
 0x1dc   : > { %403 = vadd.xlane.f32.xlu0 %v402_v15 }
 0x265   : > { %v404_v16 = vpop.xlane.xlu0 %403 }
 0x266   : > { %v405_v17 = vrot.slane %v404_v16, 4 }
 0x268   : > { %v406_v18 = vadd.f32 %v405_v17, %v404_v16 }
 0x26a   : > { %v407_v20 = vrot.slane %v406_v18, 2 }
 0x26c   : > { %v408_v21 = vadd.f32 %v407_v20, %v406_v18 }
 0x26e   : > { %v409_v22 = vrot.slane %v408_v21, 1 }
 0x270   : > { %v410_v23 = vadd.f32 %v409_v22, %v408_v21 }
 0x272   : > { %2361 = vpush %v410_v23 }
 0x2a3   : > { %s2362_s15 = spop %2361 }
 0x2a4   : > { %s412_s20 = sadd.f32 1e-30, %s2362_s15 }
 0x2a6   : > { %v413_v24 = vstv %s412_s20 }
 0x2a7   : > { %2523 = vrsqrt.f32 %v413_v24 }
 0x2b4   : > { %v2524_v25 = vpop.eup %2523 }
 0x2b5   : > { %2363 = vpush %v2524_v25 }
 0x2e6   : > { %s2364_s23 = spop %2363 }
 0x2e7   : > { %v416_v26 = vstv %s2364_s23 }
 0x2e8   : > { %v417_v27 = vmul.f32 %v416_v26, %v2829_v13 }
 0x2ea   : > { %2272 = vmatpush3.msra.mxu0 %v417_v27 }
 0x2eb   : > { %2274 = vmatmul.mubr.msk.f32.vlgmr.msra.gmra.mxu0 %vm224_vm0, %v417_v27  ;;  %2281 = vmatprep.subr.mxu0 %v2704_v19 }
 0x2ec   : > { %2283 = vmatprep.mubr.msk.f32.mxu0 %vm2705_vm5, %v2704_v19 }
 0x3ab   : > { %v487_v28 = vpop.f32.mrf.mxu0 }
 0x3ac   : > { %v491_v29 = vmul.f32 %v487_v28, %v487_v28 }
 0x3ad   : > { %v2275_v30 = vpop.f32.mrf.mxu0 }
 0x3ae   : > { %v492_v31 = vsel %vm224_vm0, %v491_v29, 0.0 }
 0x3af   : > { %493 = vadd.xlane.f32.xlu0 %v492_v31 }
 0x438   : > { %v494_v32 = vpop.xlane.xlu0 %493 }
 0x439   : > { %v495_v33 = vrot.slane %v494_v32, 4 }
 0x43b   : > { %v496_v34 = vadd.f32 %v495_v33, %v494_v32 }
 0x43d   : > { %v497_v35 = vrot.slane %v496_v34, 2 }
 0x43f   : > { %v498_v36 = vadd.f32 %v497_v35, %v496_v34 }
 0x441   : > { %v499_v37 = vrot.slane %v498_v36, 1 }
 0x443   : > { %v500_v38 = vadd.f32 %v499_v37, %v498_v36 }
 0x445   : > { %2365 = vpush %v500_v38 }
 0x476   : > { %s2366_s24 = spop %2365 }
 0x477   : > { %s502_s25 = sadd.f32 1e-30, %s2366_s24 }
 0x479   : > { %v503_v39 = vstv %s502_s25 }
 0x47a   : > { %2525 = vrsqrt.f32 %v503_v39 }
 0x487   : > { %v2526_v40 = vpop.eup %2525 }
 0x488   : > { %2367 = vpush %v2526_v40 }
 0x4b9   : > { %s2368_s26 = spop %2367 }
 0x4ba   : > { %v506_v41 = vstv %s2368_s26 }
 0x4bb   : > { %v507_v42 = vmul.f32 %v506_v41, %v487_v28 }
 0x4bd   : > { %2277 = vmatpush3.msra.mxu1 %v507_v42 }
 0x4be   : > { %2279 = vmatmul.mubr.msk.f32.vlgmr.msra.gmra.mxu1 %vm224_vm0, %v507_v42  ;;  %2286 = vmatprep.subr.mxu1 %v2704_v19 }
 0x4bf   : > { %2288 = vmatprep.mubr.msk.f32.mxu1 %vm2705_vm5, %v2704_v19 }
 0x57e   : > { %v577_v43 = vpop.f32.mrf.mxu1 }
 0x57f   : > { %v581_v44 = vmul.f32 %v577_v43, %v577_v43 }
 0x580   : > { %v2280_v45 = vpop.f32.mrf.mxu1 }
 0x581   : > { %v582_v46 = vsel %vm224_vm0, %v581_v44, 0.0 }
 0x582   : > { %583 = vadd.xlane.f32.xlu1 %v582_v46 }
 0x60b   : > { %v584_v47 = vpop.xlane.xlu1 %583 }
 0x60c   : > { %v585_v48 = vrot.slane %v584_v47, 4 }
 0x60e   : > { %v586_v49 = vadd.f32 %v585_v48, %v584_v47 }
 0x610   : > { %v587_v50 = vrot.slane %v586_v49, 2 }
 0x612   : > { %v588_v51 = vadd.f32 %v587_v50, %v586_v49 }
 0x614   : > { %v589_v52 = vrot.slane %v588_v51, 1 }
 0x616   : > { %v590_v53 = vadd.f32 %v589_v52, %v588_v51 }
 0x618   : > { %2369 = vpush %v590_v53 }
 0x649   : > { %s2370_s27 = spop %2369 }
 0x64a   : > { %s592_s28 = sadd.f32 1e-30, %s2370_s27 }
 0x64c   : > { %v593_v54 = vstv %s592_s28 }
 0x64d   : > { %2527 = vrsqrt.f32 %v593_v54 }
 0x65a   : > { %v2528_v55 = vpop.eup %2527 }
 0x65b   : > { %2371 = vpush %v2528_v55 }
 0x68c   : > { %s2372_s29 = spop %2371 }
 0x68d   : > { %v596_v56 = vstv %s2372_s29 }
 0x68e   : > { %v597_v57 = vmul.f32 %v596_v56, %v577_v43 }
 0x690   : > { %2282 = vmatpush3.msra.mxu0 %v597_v57 }
 0x691   : > { %2284 = vmatmul.mubr.msk.f32.vlgmr.msra.gmra.mxu0 %vm224_vm0, %v597_v57  ;;  %2291 = vmatprep.subr.mxu0 %v2704_v19 }
 0x692   : > { %2293 = vmatprep.mubr.msk.f32.mxu0 %vm2705_vm5, %v2704_v19 }
 0x751   : > { %v667_v58 = vpop.f32.mrf.mxu0 }
 0x752   : > { %v671_v59 = vmul.f32 %v667_v58, %v667_v58 }
 0x753   : > { %v2285_v60 = vpop.f32.mrf.mxu0 }
 0x754   : > { %v672_v61 = vsel %vm224_vm0, %v671_v59, 0.0 }
 0x755   : > { %673 = vadd.xlane.f32.xlu1 %v672_v61 }
 0x7de   : > { %v674_v62 = vpop.xlane.xlu1 %673 }
 0x7df   : > { %v675_v63 = vrot.slane %v674_v62, 4 }
 0x7e1   : > { %v676_v0 = vadd.f32 %v675_v63, %v674_v62 }
 0x7e3   : > { %v677_v1 = vrot.slane %v676_v0, 2 }
 0x7e5   : > { %v678_v2 = vadd.f32 %v677_v1, %v676_v0 }
 0x7e7   : > { %v679_v3 = vrot.slane %v678_v2, 1 }
 0x7e9   : > { %v680_v4 = vadd.f32 %v679_v3, %v678_v2 }
 0x7eb   : > { %2373 = vpush %v680_v4 }
 0x81c   : > { %s2374_s30 = spop %2373 }
 0x81d   : > { %s682_s3 = sadd.f32 1e-30, %s2374_s30 }
 0x81f   : > { %v683_v5 = vstv %s682_s3 }
 0x820   : > { %2529 = vrsqrt.f32 %v683_v5 }
 0x82d   : > { %v2530_v6 = vpop.eup %2529 }
 0x82e   : > { %2375 = vpush %v2530_v6 }
 0x85f   : > { %s2376_s4 = spop %2375 }
 0x860   : > { %v686_v7 = vstv %s2376_s4 }
 0x861   : > { %v687_v8 = vmul.f32 %v686_v7, %v667_v58 }
 0x863   : > { %2287 = vmatpush3.msra.mxu1 %v687_v8 }
 0x864   : > { %2289 = vmatmul.mubr.msk.f32.vlgmr.msra.gmra.mxu1 %vm224_vm0, %v687_v8  ;;  %2296 = vmatprep.subr.mxu1 %v2704_v19 }
 0x865   : > { %2298 = vmatprep.mubr.msk.f32.mxu1 %vm2705_vm5, %v2704_v19 }
 0x924   : > { %v757_v9 = vpop.f32.mrf.mxu1 }
 0x925   : > { %v761_v10 = vmul.f32 %v757_v9, %v757_v9 }
 0x926   : > { %v2290_v11 = vpop.f32.mrf.mxu1 }
 0x927   : > { %v762_v12 = vsel %vm224_vm0, %v761_v10, 0.0 }
 0x928   : > { %763 = vadd.xlane.f32.xlu0 %v762_v12 }
 0x9b1   : > { %v764_v14 = vpop.xlane.xlu0 %763 }
 0x9b2   : > { %v765_v15 = vrot.slane %v764_v14, 4 }
 0x9b4   : > { %v766_v16 = vadd.f32 %v765_v15, %v764_v14 }
 0x9b6   : > { %v767_v17 = vrot.slane %v766_v16, 2 }
 0x9b8   : > { %v768_v18 = vadd.f32 %v767_v17, %v766_v16 }
 0x9ba   : > { %v769_v20 = vrot.slane %v768_v18, 1 }
 0x9bc   : > { %v770_v21 = vadd.f32 %v769_v20, %v768_v18 }
 0x9be   : > { %2377 = vpush %v770_v21 }
 0x9ef   : > { %s2378_s5 = spop %2377 }
 0x9f0   : > { %s772_s6 = sadd.f32 1e-30, %s2378_s5 }
 0x9f2   : > { %v773_v22 = vstv %s772_s6 }
 0x9f3   : > { %2531 = vrsqrt.f32 %v773_v22 }
 0xa00   : > { %v2532_v23 = vpop.eup %2531 }
 0xa01   : > { %2379 = vpush %v2532_v23 }
 0xa32   : > { %s2380_s7 = spop %2379 }
 0xa33   : > { %v776_v24 = vstv %s2380_s7 }
 0xa34   : > { %v777_v25 = vmul.f32 %v776_v24, %v757_v9 }
 0xa36   : > { %2292 = vmatpush3.msra.mxu0 %v777_v25 }
 0xa37   : > { %2294 = vmatmul.mubr.msk.f32.vlgmr.msra.gmra.mxu0 %vm224_vm0, %v777_v25  ;;  %2301 = vmatprep.subr.mxu0 %v2704_v19 }
 0xa38   : > { %2303 = vmatprep.mubr.msk.f32.mxu0 %vm2705_vm5, %v2704_v19 }
 0xaf7   : > { %v847_v26 = vpop.f32.mrf.mxu0 }
 0xaf8   : > { %v851_v27 = vmul.f32 %v847_v26, %v847_v26 }
 0xaf9   : > { %v2295_v28 = vpop.f32.mrf.mxu0 }
 0xafa   : > { %v852_v29 = vsel %vm224_vm0, %v851_v27, 0.0 }
 0xafb   : > { %853 = vadd.xlane.f32.xlu1 %v852_v29 }
 0xb84   : > { %v854_v30 = vpop.xlane.xlu1 %853 }
 0xb85   : > { %v855_v31 = vrot.slane %v854_v30, 4 }
 0xb87   : > { %v856_v32 = vadd.f32 %v855_v31, %v854_v30 }
 0xb89   : > { %v857_v33 = vrot.slane %v856_v32, 2 }
 0xb8b   : > { %v858_v34 = vadd.f32 %v857_v33, %v856_v32 }
 0xb8d   : > { %v859_v35 = vrot.slane %v858_v34, 1 }
 0xb8f   : > { %v860_v36 = vadd.f32 %v859_v35, %v858_v34 }
 0xb91   : > { %2381 = vpush %v860_v36 }
 0xbc2   : > { %s2382_s16 = spop %2381 }
 0xbc3   : > { %s862_s15 = sadd.f32 1e-30, %s2382_s16 }
 0xbc5   : > { %v863_v37 = vstv %s862_s15 }
 0xbc6   : > { %2533 = vrsqrt.f32 %v863_v37 }
 0xbd3   : > { %v2534_v38 = vpop.eup %2533 }
 0xbd4   : > { %2383 = vpush %v2534_v38 }
 0xc05   : > { %s2384_s20 = spop %2383 }
 0xc06   : > { %v866_v39 = vstv %s2384_s20 }
 0xc07   : > { %v867_v40 = vmul.f32 %v866_v39, %v847_v26 }
 0xc09   : > { %2297 = vmatpush3.msra.mxu1 %v867_v40 }
 0xc0a   : > { %2299 = vmatmul.mubr.msk.f32.vlgmr.msra.gmra.mxu1 %vm224_vm0, %v867_v40  ;;  %2306 = vmatprep.subr.mxu1 %v2704_v19 }
 0xc0b   : > { %2308 = vmatprep.mubr.msk.f32.mxu1 %vm2705_vm5, %v2704_v19 }
 0xcca   : > { %v937_v41 = vpop.f32.mrf.mxu1 }
 0xccb   : > { %v941_v42 = vmul.f32 %v937_v41, %v937_v41 }
 0xccc   : > { %v2300_v43 = vpop.f32.mrf.mxu1 }
 0xccd   : > { %v942_v44 = vsel %vm224_vm0, %v941_v42, 0.0 }
 0xcce   : > { %943 = vadd.xlane.f32.xlu0 %v942_v44 }
 0xd57   : > { %v944_v45 = vpop.xlane.xlu0 %943 }
 0xd58   : > { %v945_v46 = vrot.slane %v944_v45, 4 }
 0xd5a   : > { %v946_v47 = vadd.f32 %v945_v46, %v944_v45 }
 0xd5c   : > { %v947_v48 = vrot.slane %v946_v47, 2 }
 0xd5e   : > { %v948_v49 = vadd.f32 %v947_v48, %v946_v47 }
 0xd60   : > { %v949_v50 = vrot.slane %v948_v49, 1 }
 0xd62   : > { %v950_v51 = vadd.f32 %v949_v50, %v948_v49 }
 0xd64   : > { %2385 = vpush %v950_v51 }
 0xd95   : > { %s2386_s23 = spop %2385 }
 0xd96   : > { %s952_s24 = sadd.f32 1e-30, %s2386_s23 }
 0xd98   : > { %v953_v52 = vstv %s952_s24 }
 0xd99   : > { %2535 = vrsqrt.f32 %v953_v52 }
 0xda6   : > { %v2536_v53 = vpop.eup %2535 }
 0xda7   : > { %2387 = vpush %v2536_v53 }
 0xdd8   : > { %s2388_s25 = spop %2387 }
 0xdd9   : > { %v956_v54 = vstv %s2388_s25 }
 0xdda   : > { %v957_v55 = vmul.f32 %v956_v54, %v937_v41 }
 0xddc   : > { %2302 = vmatpush3.msra.mxu0 %v957_v55 }
 0xddd   : > { %2304 = vmatmul.mubr.msk.f32.vlgmr.msra.gmra.mxu0 %vm224_vm0, %v957_v55  ;;  %2311 = vmatprep.subr.mxu0 %v2704_v19 }
 0xdde   : > { %2312 = vmatpush3.msra.mxu0 %v2829_v13  ;;  %2313 = vmatprep.mubr.msk.f32.mxu0 %vm2705_vm5, %v2704_v19 }
 0xe9d   : > { %v1027_v56 = vpop.f32.mrf.mxu0 }
 0xe9e   : > { %v1031_v57 = vmul.f32 %v1027_v56, %v1027_v56 }
 0xe9f   : > { %v2305_v58 = vpop.f32.mrf.mxu0 }
 0xea0   : > { %v1032_v59 = vsel %vm224_vm0, %v1031_v57, 0.0 }
 0xea1   : > { %1033 = vadd.xlane.f32.xlu1 %v1032_v59 }
 0xf2a   : > { %v1034_v60 = vpop.xlane.xlu1 %1033 }
 0xf2b   : > { %v1035_v61 = vrot.slane %v1034_v60, 4 }
 0xf2d   : > { %v1036_v62 = vadd.f32 %v1035_v61, %v1034_v60 }
 0xf2f   : > { %v1037_v63 = vrot.slane %v1036_v62, 2 }
 0xf31   : > { %v1038_v0 = vadd.f32 %v1037_v63, %v1036_v62 }
 0xf33   : > { %v1039_v1 = vrot.slane %v1038_v0, 1 }
 0xf35   : > { %v1040_v2 = vadd.f32 %v1039_v1, %v1038_v0 }
 0xf37   : > { %2389 = vpush %v1040_v2 }
 0xf68   : > { %s2390_s26 = spop %2389 }
 0xf69   : > { %s1042_s27 = sadd.f32 1e-30, %s2390_s26 }
 0xf6b   : > { %v1043_v13 = vstv %s1042_s27 }
 0xf6c   : > { %2537 = vrsqrt.f32 %v1043_v13 }
 0xf79   : > { %v2538_v3 = vpop.eup %2537 }
 0xf7a   : > { %2391 = vpush %v2538_v3 }
 0xfab   : > { %s2392_s28 = spop %2391 }
 0xfac   : > { %v1046_v19 = vstv %s2392_s28 }
 0xfad   : > { %v1047_v4 = vmul.f32 %v1046_v19, %v1027_v56 }
 0xfaf   : > { %2307 = vmatpush3.msra.mxu1 %v1047_v4 }
 0xfb0   : > { %2309 = vmatmul.mubr.msk.f32.vlgmr.msra.gmra.mxu1 %vm224_vm0, %v1047_v4 }
0x1070   : > { %v1117_v5 = vpop.f32.mrf.mxu1 }
0x1071   : > { %v1121_v6 = vsel %vm224_vm0, %v1117_v5, 0.0 }
0x1072   : > { %v1122_v7 = vrot.slane %v1121_v6, 4  ;;  %v2310_v8 = vpop.f32.mrf.mxu1 }
0x1074   : > { %v1123_v9 = vadd.f32 %v1122_v7, %v1121_v6 }
0x1076   : > { %v1124_v10 = vrot.slane %v1123_v9, 2 }
0x1078   : > { %v1125_v11 = vadd.f32 %v1124_v10, %v1123_v9 }
0x107a   : > { %v1126_v12 = vrot.slane %v1125_v11, 1 }
0x107c   : > { %v1127_v14 = vadd.f32 %v1126_v12, %v1125_v11 }
0x107e   : > { %2314 = vmatmul.mubr.msk.f32.vlgmr.msra.gmra.mxu0 %vm224_vm0, %v1127_v14  ;;  %v1213_v15 = vmul.f32 %v1127_v14, %v1127_v14 }
0x1080   : > { %v1214_v16 = vsel %vm1202_vm6, %v1213_v15, 0.0 }
0x1081   : > { %1215 = vadd.xlane.f32.xlu1 %v1214_v16 }
0x110a   : > { %v1216_v22 = vpop.xlane.xlu1 %1215 }
0x110b   : > { %v1217_v23 = vrot.slane %v1216_v22, 4 }
0x110d   : > { %v1218_v24 = vadd.f32 %v1217_v23, %v1216_v22 }
0x110f   : > { %v1219_v25 = vrot.slane %v1218_v24, 2 }
0x1111   : > { %v1220_v29 = vadd.f32 %v1219_v25, %v1218_v24 }
0x1113   : > { %v1221_v32 = vrot.slane %v1220_v29, 1 }
0x1115   : > { %v1222_v35 = vadd.f32 %v1221_v32, %v1220_v29 }
0x113e   : > { %v1197_v17 = vpop.f32.mrf.mxu0 }
0x113f   : > { %v1201_v18 = vmul.f32 %v1197_v17, %v1127_v14 }
0x1140   : > { %v2315_v20 = vpop.f32.mrf.mxu0 }
0x1141   : > { %v1203_v21 = vsel %vm1202_vm6, %v1201_v18, 0.0 }
0x1142   : > { %1204 = vadd.xlane.f32.xlu0 %v1203_v21 }
0x11cb   : > { %v1205_v26 = vpop.xlane.xlu0 %1204 }
0x11cc   : > { %v1206_v27 = vrot.slane %v1205_v26, 4 }
0x11ce   : > { %v1207_v28 = vadd.f32 %v1206_v27, %v1205_v26 }
0x11d0   : > { %v1208_v30 = vrot.slane %v1207_v28, 2 }
0x11d2   : > { %v1209_v31 = vadd.f32 %v1208_v30, %v1207_v28 }
0x11d4   : > { %v1210_v33 = vrot.slane %v1209_v31, 1 }
0x11d6   : > { %v1211_v34 = vadd.f32 %v1210_v33, %v1209_v31 }
0x11d8   : > { %2393 = vpush %v1211_v34 }
0x11d9   : > { %2395 = vpush %v1222_v35 }
0x1209   : > { %s2394_s29 = spop %2393 }
0x120a   : > { %s2396_s30 = spop %2395 }
0x120b   : > { %s1224_s3 = sadd.f32 1e-30, %s2396_s30 }
0x120d   : > { %v1225_v36 = vstv %s1224_s3 }
0x120e   : > { %2539 = vrcp.f32 %v1225_v36 }
0x121b   : > { %v2540_v37 = vpop.eup %2539 }
0x121c   : > { %2397 = vpush %v2540_v37 }
0x124d   : > { %s2398_s4 = spop %2397 }
0x124e   : > { %s1228_s5 = smul.f32 %s2398_s4, %s2394_s29 }
0x1250   : > { %v1229_v38 = vstv %s1228_s5 }
0x1251   : > { %1230 = vst [vmem:[%s2817_s18] sm:$0xff] %v1229_v38 }
0x1252 PF: > { %1233 = sbr.rel (%p2194_p12) target bundleno = 8913 (0x22d1), region = 60 }
0x1257   : > { %v2883_v39 = vld [vmem:[#allocation3] sm:$0xff]  ;;  %v2706_v45 = vmov 0.0   ;;  %vm2707_vm7 = vmmov 0   ;;  %vm2037_vm8 = vcmask 57344  }
0x1258   : > { %v1235_v40 = vmul.f32 %v2883_v39, %v2883_v39  ;;  %2316 = vmatprep.subr.mxu0 %v2706_v45  ;;  %2321 = vmatprep.subr.mxu1 %v2706_v45 }
0x1259   : > { %2318 = vmatprep.mubr.msk.f32.mxu0 %vm2707_vm7, %v2706_v45  ;;  %2323 = vmatprep.mubr.msk.f32.mxu1 %vm2707_vm7, %v2706_v45 }
0x125a   : > { %v1237_v41 = vsel %vm224_vm0, %v1235_v40, 0.0 }
0x125b   : > { %1238 = vadd.xlane.f32.xlu0 %v1237_v41 }
0x12e4   : > { %v1239_v42 = vpop.xlane.xlu0 %1238 }
0x12e5   : > { %v1240_v43 = vrot.slane %v1239_v42, 4 }
0x12e7   : > { %v1241_v44 = vadd.f32 %v1240_v43, %v1239_v42 }
0x12e9   : > { %v1242_v46 = vrot.slane %v1241_v44, 2 }
0x12eb   : > { %v1243_v47 = vadd.f32 %v1242_v46, %v1241_v44 }
0x12ed   : > { %v1244_v48 = vrot.slane %v1243_v47, 1 }
0x12ef   : > { %v1245_v49 = vadd.f32 %v1244_v48, %v1243_v47 }
0x12f1   : > { %2399 = vpush %v1245_v49 }
0x1322   : > { %s2400_s6 = spop %2399 }
0x1323   : > { %s1247_s7 = sadd.f32 1e-30, %s2400_s6 }
0x1325   : > { %v1248_v50 = vstv %s1247_s7 }
0x1326   : > { %2541 = vrsqrt.f32 %v1248_v50 }
0x1333   : > { %v2542_v51 = vpop.eup %2541 }
0x1334   : > { %2401 = vpush %v2542_v51 }
0x1365   : > { %s2402_s16 = spop %2401 }
0x1366   : > { %v1251_v52 = vstv %s2402_s16 }
0x1367   : > { %v1252_v53 = vmul.f32 %v1251_v52, %v2883_v39 }
0x1369   : > { %2317 = vmatpush3.msra.mxu0 %v1252_v53 }
0x136a   : > { %2319 = vmatmul.mubr.msk.f32.vlgmr.msra.gmra.mxu0 %vm224_vm0, %v1252_v53  ;;  %2326 = vmatprep.subr.mxu0 %v2706_v45 }
0x136b   : > { %2328 = vmatprep.mubr.msk.f32.mxu0 %vm2707_vm7, %v2706_v45 }
0x142a   : > { %v1322_v54 = vpop.f32.mrf.mxu0 }
0x142b   : > { %v1326_v55 = vmul.f32 %v1322_v54, %v1322_v54 }
0x142c   : > { %v2320_v56 = vpop.f32.mrf.mxu0 }
0x142d   : > { %v1327_v57 = vsel %vm224_vm0, %v1326_v55, 0.0 }
0x142e   : > { %1328 = vadd.xlane.f32.xlu0 %v1327_v57 }
0x14b7   : > { %v1329_v58 = vpop.xlane.xlu0 %1328 }
0x14b8   : > { %v1330_v59 = vrot.slane %v1329_v58, 4 }
0x14ba   : > { %v1331_v60 = vadd.f32 %v1330_v59, %v1329_v58 }
0x14bc   : > { %v1332_v61 = vrot.slane %v1331_v60, 2 }
0x14be   : > { %v1333_v62 = vadd.f32 %v1332_v61, %v1331_v60 }
0x14c0   : > { %v1334_v63 = vrot.slane %v1333_v62, 1 }
0x14c2   : > { %v1335_v0 = vadd.f32 %v1334_v63, %v1333_v62 }
0x14c4   : > { %2403 = vpush %v1335_v0 }
0x14f5   : > { %s2404_s15 = spop %2403 }
0x14f6   : > { %s1337_s20 = sadd.f32 1e-30, %s2404_s15 }
0x14f8   : > { %v1338_v1 = vstv %s1337_s20 }
0x14f9   : > { %2543 = vrsqrt.f32 %v1338_v1 }
0x1506   : > { %v2544_v2 = vpop.eup %2543 }
0x1507   : > { %2405 = vpush %v2544_v2 }
0x1538   : > { %s2406_s23 = spop %2405 }
0x1539   : > { %v1341_v13 = vstv %s2406_s23 }
0x153a   : > { %v1342_v3 = vmul.f32 %v1341_v13, %v1322_v54 }
0x153c   : > { %2322 = vmatpush3.msra.mxu1 %v1342_v3 }
0x153d   : > { %2324 = vmatmul.mubr.msk.f32.vlgmr.msra.gmra.mxu1 %vm224_vm0, %v1342_v3  ;;  %2331 = vmatprep.subr.mxu1 %v2706_v45 }
0x153e   : > { %2333 = vmatprep.mubr.msk.f32.mxu1 %vm2707_vm7, %v2706_v45 }
0x15fd   : > { %v1412_v19 = vpop.f32.mrf.mxu1 }
0x15fe   : > { %v1416_v4 = vmul.f32 %v1412_v19, %v1412_v19 }
0x15ff   : > { %v2325_v5 = vpop.f32.mrf.mxu1 }
0x1600   : > { %v1417_v6 = vsel %vm224_vm0, %v1416_v4, 0.0 }
0x1601   : > { %1418 = vadd.xlane.f32.xlu1 %v1417_v6 }
0x168a   : > { %v1419_v7 = vpop.xlane.xlu1 %1418 }
0x168b   : > { %v1420_v8 = vrot.slane %v1419_v7, 4 }
0x168d   : > { %v1421_v9 = vadd.f32 %v1420_v8, %v1419_v7 }
0x168f   : > { %v1422_v10 = vrot.slane %v1421_v9, 2 }
0x1691   : > { %v1423_v11 = vadd.f32 %v1422_v10, %v1421_v9 }
0x1693   : > { %v1424_v12 = vrot.slane %v1423_v11, 1 }
0x1695   : > { %v1425_v14 = vadd.f32 %v1424_v12, %v1423_v11 }
0x1697   : > { %2407 = vpush %v1425_v14 }
0x16c8   : > { %s2408_s24 = spop %2407 }
0x16c9   : > { %s1427_s25 = sadd.f32 1e-30, %s2408_s24 }
0x16cb   : > { %v1428_v15 = vstv %s1427_s25 }
0x16cc   : > { %2545 = vrsqrt.f32 %v1428_v15 }
0x16d9   : > { %v2546_v16 = vpop.eup %2545 }
0x16da   : > { %2409 = vpush %v2546_v16 }
0x170b   : > { %s2410_s26 = spop %2409 }
0x170c   : > { %v1431_v17 = vstv %s2410_s26 }
0x170d   : > { %v1432_v18 = vmul.f32 %v1431_v17, %v1412_v19 }
0x170f   : > { %2327 = vmatpush3.msra.mxu0 %v1432_v18 }
0x1710   : > { %2329 = vmatmul.mubr.msk.f32.vlgmr.msra.gmra.mxu0 %vm224_vm0, %v1432_v18  ;;  %2336 = vmatprep.subr.mxu0 %v2706_v45 }
0x1711   : > { %2338 = vmatprep.mubr.msk.f32.mxu0 %vm2707_vm7, %v2706_v45 }
0x17d0   : > { %v1502_v20 = vpop.f32.mrf.mxu0 }
0x17d1   : > { %v1506_v21 = vmul.f32 %v1502_v20, %v1502_v20 }
0x17d2   : > { %v2330_v22 = vpop.f32.mrf.mxu0 }
0x17d3   : > { %v1507_v23 = vsel %vm224_vm0, %v1506_v21, 0.0 }
0x17d4   : > { %1508 = vadd.xlane.f32.xlu1 %v1507_v23 }
0x185d   : > { %v1509_v24 = vpop.xlane.xlu1 %1508 }
0x185e   : > { %v1510_v25 = vrot.slane %v1509_v24, 4 }
0x1860   : > { %v1511_v26 = vadd.f32 %v1510_v25, %v1509_v24 }
0x1862   : > { %v1512_v27 = vrot.slane %v1511_v26, 2 }
0x1864   : > { %v1513_v28 = vadd.f32 %v1512_v27, %v1511_v26 }
0x1866   : > { %v1514_v29 = vrot.slane %v1513_v28, 1 }
0x1868   : > { %v1515_v30 = vadd.f32 %v1514_v29, %v1513_v28 }
0x186a   : > { %2411 = vpush %v1515_v30 }
0x189b   : > { %s2412_s27 = spop %2411 }
0x189c   : > { %s1517_s28 = sadd.f32 1e-30, %s2412_s27 }
0x189e   : > { %v1518_v31 = vstv %s1517_s28 }
0x189f   : > { %2547 = vrsqrt.f32 %v1518_v31 }
0x18ac   : > { %v2548_v32 = vpop.eup %2547 }
0x18ad   : > { %2413 = vpush %v2548_v32 }
0x18de   : > { %s2414_s29 = spop %2413 }
0x18df   : > { %v1521_v33 = vstv %s2414_s29 }
0x18e0   : > { %v1522_v34 = vmul.f32 %v1521_v33, %v1502_v20 }
0x18e2   : > { %2332 = vmatpush3.msra.mxu1 %v1522_v34 }
0x18e3   : > { %2334 = vmatmul.mubr.msk.f32.vlgmr.msra.gmra.mxu1 %vm224_vm0, %v1522_v34  ;;  %2341 = vmatprep.subr.mxu1 %v2706_v45 }
0x18e4   : > { %2343 = vmatprep.mubr.msk.f32.mxu1 %vm2707_vm7, %v2706_v45 }
0x19a3   : > { %v1592_v35 = vpop.f32.mrf.mxu1 }
0x19a4   : > { %v1596_v36 = vmul.f32 %v1592_v35, %v1592_v35 }
0x19a5   : > { %v2335_v37 = vpop.f32.mrf.mxu1 }
0x19a6   : > { %v1597_v38 = vsel %vm224_vm0, %v1596_v36, 0.0 }
0x19a7   : > { %1598 = vadd.xlane.f32.xlu0 %v1597_v38 }
0x1a30   : > { %v1599_v40 = vpop.xlane.xlu0 %1598 }
0x1a31   : > { %v1600_v41 = vrot.slane %v1599_v40, 4 }
0x1a33   : > { %v1601_v42 = vadd.f32 %v1600_v41, %v1599_v40 }
0x1a35   : > { %v1602_v43 = vrot.slane %v1601_v42, 2 }
0x1a37   : > { %v1603_v44 = vadd.f32 %v1602_v43, %v1601_v42 }
0x1a39   : > { %v1604_v46 = vrot.slane %v1603_v44, 1 }
0x1a3b   : > { %v1605_v47 = vadd.f32 %v1604_v46, %v1603_v44 }
0x1a3d   : > { %2415 = vpush %v1605_v47 }
0x1a6e   : > { %s2416_s30 = spop %2415 }
0x1a6f   : > { %s1607_s3 = sadd.f32 1e-30, %s2416_s30 }
0x1a71   : > { %v1608_v48 = vstv %s1607_s3 }
0x1a72   : > { %2549 = vrsqrt.f32 %v1608_v48 }
0x1a7f   : > { %v2550_v49 = vpop.eup %2549 }
0x1a80   : > { %2417 = vpush %v2550_v49 }
0x1ab1   : > { %s2418_s4 = spop %2417 }
0x1ab2   : > { %v1611_v50 = vstv %s2418_s4 }
0x1ab3   : > { %v1612_v51 = vmul.f32 %v1611_v50, %v1592_v35 }
0x1ab5   : > { %2337 = vmatpush3.msra.mxu0 %v1612_v51 }
0x1ab6   : > { %2339 = vmatmul.mubr.msk.f32.vlgmr.msra.gmra.mxu0 %vm224_vm0, %v1612_v51  ;;  %2346 = vmatprep.subr.mxu0 %v2706_v45 }
0x1ab7   : > { %2348 = vmatprep.mubr.msk.f32.mxu0 %vm2707_vm7, %v2706_v45 }
0x1b76   : > { %v1682_v52 = vpop.f32.mrf.mxu0 }
0x1b77   : > { %v1686_v53 = vmul.f32 %v1682_v52, %v1682_v52 }
0x1b78   : > { %v2340_v54 = vpop.f32.mrf.mxu0 }
0x1b79   : > { %v1687_v55 = vsel %vm224_vm0, %v1686_v53, 0.0 }
0x1b7a   : > { %1688 = vadd.xlane.f32.xlu1 %v1687_v55 }
0x1c03   : > { %v1689_v56 = vpop.xlane.xlu1 %1688 }
0x1c04   : > { %v1690_v57 = vrot.slane %v1689_v56, 4 }
0x1c06   : > { %v1691_v58 = vadd.f32 %v1690_v57, %v1689_v56 }
0x1c08   : > { %v1692_v59 = vrot.slane %v1691_v58, 2 }
0x1c0a   : > { %v1693_v60 = vadd.f32 %v1692_v59, %v1691_v58 }
0x1c0c   : > { %v1694_v61 = vrot.slane %v1693_v60, 1 }
0x1c0e   : > { %v1695_v62 = vadd.f32 %v1694_v61, %v1693_v60 }
0x1c10   : > { %2419 = vpush %v1695_v62 }
0x1c41   : > { %s2420_s5 = spop %2419 }
0x1c42   : > { %s1697_s6 = sadd.f32 1e-30, %s2420_s5 }
0x1c44   : > { %v1698_v63 = vstv %s1697_s6 }
0x1c45   : > { %2551 = vrsqrt.f32 %v1698_v63 }
0x1c52   : > { %v2552_v0 = vpop.eup %2551 }
0x1c53   : > { %2421 = vpush %v2552_v0 }
0x1c84   : > { %s2422_s7 = spop %2421 }
0x1c85   : > { %v1701_v1 = vstv %s2422_s7 }
0x1c86   : > { %v1702_v2 = vmul.f32 %v1701_v1, %v1682_v52 }
0x1c88   : > { %2342 = vmatpush3.msra.mxu1 %v1702_v2 }
0x1c89   : > { %2344 = vmatmul.mubr.msk.f32.vlgmr.msra.gmra.mxu1 %vm224_vm0, %v1702_v2  ;;  %2351 = vmatprep.subr.mxu1 %v2706_v45 }
0x1c8a   : > { %2353 = vmatprep.mubr.msk.f32.mxu1 %vm2707_vm7, %v2706_v45 }
0x1d49   : > { %v1772_v13 = vpop.f32.mrf.mxu1 }
0x1d4a   : > { %v1776_v3 = vmul.f32 %v1772_v13, %v1772_v13 }
0x1d4b   : > { %v2345_v19 = vpop.f32.mrf.mxu1 }
0x1d4c   : > { %v1777_v4 = vsel %vm224_vm0, %v1776_v3, 0.0 }
0x1d4d   : > { %1778 = vadd.xlane.f32.xlu0 %v1777_v4 }
0x1dd6   : > { %v1779_v5 = vpop.xlane.xlu0 %1778 }
0x1dd7   : > { %v1780_v6 = vrot.slane %v1779_v5, 4 }
0x1dd9   : > { %v1781_v7 = vadd.f32 %v1780_v6, %v1779_v5 }
0x1ddb   : > { %v1782_v8 = vrot.slane %v1781_v7, 2 }
0x1ddd   : > { %v1783_v9 = vadd.f32 %v1782_v8, %v1781_v7 }
0x1ddf   : > { %v1784_v10 = vrot.slane %v1783_v9, 1 }
0x1de1   : > { %v1785_v11 = vadd.f32 %v1784_v10, %v1783_v9 }
0x1de3   : > { %2423 = vpush %v1785_v11 }
0x1e14   : > { %s2424_s16 = spop %2423 }
0x1e15   : > { %s1787_s15 = sadd.f32 1e-30, %s2424_s16 }
0x1e17   : > { %v1788_v12 = vstv %s1787_s15 }
0x1e18   : > { %2553 = vrsqrt.f32 %v1788_v12 }
0x1e25   : > { %v2554_v14 = vpop.eup %2553 }
0x1e26   : > { %2425 = vpush %v2554_v14 }
0x1e57   : > { %s2426_s20 = spop %2425 }
0x1e58   : > { %v1791_v15 = vstv %s2426_s20 }
0x1e59   : > { %v1792_v16 = vmul.f32 %v1791_v15, %v1772_v13 }
0x1e5b   : > { %2347 = vmatpush3.msra.mxu0 %v1792_v16 }
0x1e5c   : > { %2349 = vmatmul.mubr.msk.f32.vlgmr.msra.gmra.mxu0 %vm224_vm0, %v1792_v16  ;;  %2356 = vmatprep.subr.mxu0 %v2706_v45 }
0x1e5d   : > { %2357 = vmatpush3.msra.mxu0 %v2883_v39  ;;  %2358 = vmatprep.mubr.msk.f32.mxu0 %vm2707_vm7, %v2706_v45 }
0x1f1c   : > { %v1862_v17 = vpop.f32.mrf.mxu0 }
0x1f1d   : > { %v1866_v18 = vmul.f32 %v1862_v17, %v1862_v17 }
0x1f1e   : > { %v2350_v20 = vpop.f32.mrf.mxu0 }
0x1f1f   : > { %v1867_v21 = vsel %vm224_vm0, %v1866_v18, 0.0 }
0x1f20   : > { %1868 = vadd.xlane.f32.xlu1 %v1867_v21 }
0x1fa9   : > { %v1869_v22 = vpop.xlane.xlu1 %1868 }
0x1faa   : > { %v1870_v23 = vrot.slane %v1869_v22, 4 }
0x1fac   : > { %v1871_v24 = vadd.f32 %v1870_v23, %v1869_v22 }
0x1fae   : > { %v1872_v25 = vrot.slane %v1871_v24, 2 }
0x1fb0   : > { %v1873_v26 = vadd.f32 %v1872_v25, %v1871_v24 }
0x1fb2   : > { %v1874_v27 = vrot.slane %v1873_v26, 1 }
0x1fb4   : > { %v1875_v28 = vadd.f32 %v1874_v27, %v1873_v26 }
0x1fb6   : > { %2427 = vpush %v1875_v28 }
0x1fe7   : > { %s2428_s23 = spop %2427 }
0x1fe8   : > { %s1877_s24 = sadd.f32 1e-30, %s2428_s23 }
0x1fea   : > { %v1878_v39 = vstv %s1877_s24 }
0x1feb   : > { %2555 = vrsqrt.f32 %v1878_v39 }
0x1ff8   : > { %v2556_v29 = vpop.eup %2555 }
0x1ff9   : > { %2429 = vpush %v2556_v29 }
0x202a   : > { %s2430_s25 = spop %2429 }
0x202b   : > { %v1881_v45 = vstv %s2430_s25 }
0x202c   : > { %v1882_v30 = vmul.f32 %v1881_v45, %v1862_v17 }
0x202e   : > { %2352 = vmatpush3.msra.mxu1 %v1882_v30 }
0x202f   : > { %2354 = vmatmul.mubr.msk.f32.vlgmr.msra.gmra.mxu1 %vm224_vm0, %v1882_v30 }
0x20ef   : > { %v1952_v31 = vpop.f32.mrf.mxu1 }
0x20f0   : > { %v1956_v32 = vsel %vm224_vm0, %v1952_v31, 0.0 }
0x20f1   : > { %v1957_v33 = vrot.slane %v1956_v32, 4  ;;  %v2355_v34 = vpop.f32.mrf.mxu1 }
0x20f3   : > { %v1958_v35 = vadd.f32 %v1957_v33, %v1956_v32 }
0x20f5   : > { %v1959_v36 = vrot.slane %v1958_v35, 2 }
0x20f7   : > { %v1960_v37 = vadd.f32 %v1959_v36, %v1958_v35 }
0x20f9   : > { %v1961_v38 = vrot.slane %v1960_v37, 1 }
0x20fb   : > { %v1962_v40 = vadd.f32 %v1961_v38, %v1960_v37 }
0x20fd   : > { %2359 = vmatmul.mubr.msk.f32.vlgmr.msra.gmra.mxu0 %vm224_vm0, %v1962_v40  ;;  %v2048_v41 = vmul.f32 %v1962_v40, %v1962_v40 }
0x20ff   : > { %v2049_v42 = vsel %vm2037_vm8, %v2048_v41, 0.0 }
0x2100   : > { %2050 = vadd.xlane.f32.xlu1 %v2049_v42 }
0x2189   : > { %v2051_v48 = vpop.xlane.xlu1 %2050 }
0x218a   : > { %v2052_v49 = vrot.slane %v2051_v48, 4 }
0x218c   : > { %v2053_v50 = vadd.f32 %v2052_v49, %v2051_v48 }
0x218e   : > { %v2054_v51 = vrot.slane %v2053_v50, 2 }
0x2190   : > { %v2055_v55 = vadd.f32 %v2054_v51, %v2053_v50 }
0x2192   : > { %v2056_v58 = vrot.slane %v2055_v55, 1 }
0x2194   : > { %v2057_v61 = vadd.f32 %v2056_v58, %v2055_v55 }
0x21bd   : > { %v2032_v43 = vpop.f32.mrf.mxu0 }
0x21be   : > { %v2036_v44 = vmul.f32 %v2032_v43, %v1962_v40 }
0x21bf   : > { %v2360_v46 = vpop.f32.mrf.mxu0 }
0x21c0   : > { %v2038_v47 = vsel %vm2037_vm8, %v2036_v44, 0.0 }
0x21c1   : > { %2039 = vadd.xlane.f32.xlu0 %v2038_v47 }
0x224a   : > { %v2040_v52 = vpop.xlane.xlu0 %2039 }
0x224b   : > { %v2041_v53 = vrot.slane %v2040_v52, 4 }
0x224d   : > { %v2042_v54 = vadd.f32 %v2041_v53, %v2040_v52 }
0x224f   : > { %v2043_v56 = vrot.slane %v2042_v54, 2 }
0x2251   : > { %v2044_v57 = vadd.f32 %v2043_v56, %v2042_v54 }
0x2253   : > { %v2045_v59 = vrot.slane %v2044_v57, 1 }
0x2255   : > { %v2046_v60 = vadd.f32 %v2045_v59, %v2044_v57 }
0x2257   : > { %2431 = vpush %v2046_v60 }
0x2258   : > { %2433 = vpush %v2057_v61 }
0x2288   : > { %s2432_s26 = spop %2431 }
0x2289   : > { %s2434_s27 = spop %2433 }
0x228a   : > { %s2059_s28 = sadd.f32 1e-30, %s2434_s27 }
0x228c   : > { %v2060_v62 = vstv %s2059_s28 }
0x228d   : > { %2557 = vrcp.f32 %v2060_v62 }
0x229a   : > { %v2558_v63 = vpop.eup %2557 }
0x229b   : > { %2435 = vpush %v2558_v63 }
0x22cc   : > { %s2436_s29 = spop %2435 }
0x22cd   : > { %s2063_s30 = smul.f32 %s2436_s29, %s2432_s26 }
0x22cf   : > { %v2064_v0 = vstv %s2063_s30 }
0x22d0   : > { %2065 = vst [vmem:[%s2817_s18] sm:$0xff] %v2064_v0 }
0x22d1 PF: > { %s2218_s3 = sshll.u32 %s2687_s12, 7  ;;  %s2080_s7 = sshll.u32 %s2817_s18, 4  ;;  %s2081_s7 = int_to_ptr.vmem [resolvable:$true] %s2080_s7 }
0x22d2   : > { %s2078_s6 = scalar_lea.hbm %s2979_s2, %s2218_s3  ;;  %s2067_s16 = scalar_lea.sflag [#allocation6], %s214_s8 }
0x22d3   : > { %s2611_s15 = scalar_lea.vmem %s2081_s7, 128  ;;  %s2708_s20 = smov [#allocation9]  }
0x22d4   : > { %p2612_p13 = scmp.ne.s32.totalorder %s2081_s7, %s2611_s15  ;;  %s2615_s23 = sshll.u32 %s2708_s20, 4  ;;  %s2616_s23 = int_to_ptr.vmem [resolvable:$false] %s2615_s23 }
0x22d5   : > { %s2617_s24 = scalar_lea.vmem %s2616_s23, 256  ;;  %p2618_p2 = scmp.lt.s32.totalorder %s2081_s7, %s2616_s23 }
0x22d6   : > { %p2613_p0 = pnand %p2612_p13, %p2766_p4  ;;  %p2619_p3 = scmp.lt.s32.totalorder %s2617_s24, %s2611_s15 }
0x22d8   : > { %p2614_p1 = pneg %p2613_p0  ;;  %p2620_p5 = por %p2619_p3, %p2618_p2 }
0x22da   : > { %p2621_p7 = pnand %p2620_p5, %p2614_p1 }
0x22dc   : > { %2624 = shalt.err (!%p2621_p7)
}
0x22dd   : > { %s2625_s12 = scalar_lea.hbm %s2078_s6, 128  ;;  %s2629_s25 = scalar_lea.hbm %s2979_s2, 256 }
0x22de   : > { %p2626_p9 = scmp.ne.s32.totalorder %s2078_s6, %s2625_s12  ;;  %p2630_p6 = scmp.lt.s32.totalorder %s2078_s6, %s2979_s2 }
0x22df   : > { %p2631_p12 = scmp.lt.s32.totalorder %s2629_s25, %s2625_s12 }
0x22e0   : > { %p2627_p10 = pnand %p2626_p9, %p2766_p4 }
0x22e1   : > { %p2632_p13 = por %p2631_p12, %p2630_p6 }
0x22e2   : > { %p2628_p11 = pneg %p2627_p10 }
0x22e4   : > { %p2633_p0 = pnand %p2632_p13, %p2628_p11 }
0x22e6   : > { %2636 = shalt.err (!%p2633_p0)
}
0x22e7   : > { %2445 = dma.vmem_to_hbm [thread:$0]  (%p2766_p4), %s2081_s7, 128, %s2078_s6, %s2067_s16  }
0x22e8 PF: > { %s2092_s28 = sand.u32 1, %s2675_s9   ;;  %p2983_p1 = scmp.ge.s32.totalorder %s2695_s14, 2 }
0x22e9   : > { %s2093_s29 = scalar_lea.sflag [#allocation6], %s2092_s28 }
0x22ea   : > { %p2455_p2 = pnand %p2983_p1, %p2773_p8 }
0x22ec   : > { %p2456_p3 = pneg %p2455_p2 }
0x22ee   : > { %2670 = dma.done.wait (%p2456_p3), %s2093_s29, 128  }
0x22ef   : > { %2672 = vsyncadd (%p2456_p3), %s2093_s29, 4294967168  ;;  %s21_s14 = sadd.s32 1, %s2695_s14   ;;  %s2984_s9 = smov %s2679_s10 }
0x22f0   : > { %p18_p5 = scmp.ge.s32.totalorder %s21_s14, 4   ;;  %s2985_s10 = smov %s2683_s11 }
0x22f1   : > { %s2986_s11 = smov %s2779_s22  ;;  %s2987_s12 = smov %s2691_s13 }
0x22f2   : > { %s2988_s13 = smov %s2990_s17  ;;  %20 = sbr.rel (!%p18_p5) target bundleno = 8 (0x8), region = 110 }
0x22f7   :  { %2098 = vsyncpa [#allocation5], 1 }
0x22f8   :  { %2100 = vsyncpa [#allocation5 + $0x1], 1 }
0x22f9   :  { %2101 = vsyncpa [#allocation8], 1 }
0x22fa   :  { %2103 = vsyncpa [#allocation8 + $0x1], 1 }
0x22fb   :  { %2104 = vsyncpa [#allocation6], 1 }
0x22fc   :  { %2106 = vsyncpa [#allocation6 + $0x1], 1 }

</bundles_post_ra>
